<compile_context>
chip_gen: v7x
topology: tpu7x:2x2x1
jax: 0.10.0
libtpu: 0.0.40
codegen_flags: <defaults>
</compile_context>

<pallas_src>
import functools

import jax
import jax.numpy as jnp
from jax import lax
from jax.experimental import pallas as pl
from jax.experimental.pallas import tpu as pltpu

LANE = 128          # lane width: feature dims padded to this
TN = 128            # node-row tile
TE = 128            # edge tile (lane-dense classifier output blocks)

# Aggregation matmul dtype. Set to jnp.bfloat16 on v6e/v7x for ~2x MXU rate and
# half the HBM/VMEM traffic on the dense A stripes (f32 accumulation is kept
# via preferred_element_type); requires loosening the test tolerance.
AGG_DTYPE = jnp.float32


def _round_up(v, m):
    return ((v + m - 1) // m) * m


def _pad_axis(x, target, axis):
    pad = target - x.shape[axis]
    if pad == 0:
        return x
    widths = [(0, 0)] * x.ndim
    widths[axis] = (0, pad)
    return jnp.pad(x, widths)


def _compiler_params():
    return pltpu.CompilerParams(
        dimension_semantics=("parallel",),
        vmem_limit_bytes=48 * 1024 * 1024,
    )


# ----------------------------------------------------------------------------
# Kernel 1: node linear  h = x @ W + b   (tiled over node row-blocks)
# ----------------------------------------------------------------------------
def lin_kernel(x_ref, w_ref, b_ref, o_ref):
    o_ref[...] = (
        jnp.dot(x_ref[...], w_ref[...], preferred_element_type=jnp.float32)
        + b_ref[...]
    )


def linear_call(x_pad, w_pad, b_pad):
    n_pad, f_pad = x_pad.shape
    h_pad = w_pad.shape[1]
    cost = pl.CostEstimate(
        flops=2 * n_pad * f_pad * h_pad,
        transcendentals=0,
        bytes_accessed=4 * (n_pad * f_pad + f_pad * h_pad + n_pad * h_pad),
    )
    return pl.pallas_call(
        lin_kernel,
        out_shape=jax.ShapeDtypeStruct((n_pad, h_pad), jnp.float32),
        grid_spec=pltpu.PrefetchScalarGridSpec(
            num_scalar_prefetch=0,
            grid=(n_pad // TN,),
            in_specs=[
                pl.BlockSpec((TN, f_pad), lambda i: (i, 0)),
                pl.BlockSpec((f_pad, h_pad), lambda i: (0, 0)),
                pl.BlockSpec((1, h_pad), lambda i: (0, 0)),
            ],
            out_specs=pl.BlockSpec((TN, h_pad), lambda i: (i, 0)),
        ),
        compiler_params=_compiler_params(),
        cost_estimate=cost,
    )(x_pad, w_pad, b_pad)


# ----------------------------------------------------------------------------
# Kernel 2: SAGEConv layer (PyG default, aggr='mean'):
#   out_i = concat([mean_{j in N(i)} h_j, h_i]) @ [[W_l],[W_r]] + b
# Tiled over node row-blocks: each grid step gets one (TN, N) stripe of the
# row-normalized adjacency and the full H (VMEM-resident across the grid).
# ----------------------------------------------------------------------------
def sage_kernel(a_ref, h_ref, w_ref, b_ref, o_ref, *, tn, apply_relu, agg_dtype):
    i = pl.program_id(0)
    start = pl.multiple_of(i * tn, tn)
    h_blk = h_ref[pl.ds(start, tn), :]                                  # self term
    agg = jnp.dot(a_ref[...].astype(agg_dtype), h_ref[...].astype(agg_dtype),
                  preferred_element_type=jnp.float32)                   # mean agg
    cat = jnp.concatenate([agg, h_blk], axis=-1)                        # (tn, 2H)
    out = jnp.dot(cat, w_ref[...], preferred_element_type=jnp.float32) + b_ref[...]
    if apply_relu:
        out = jnp.maximum(out, 0.0)
    o_ref[...] = out


def sage_call(a_pad, h_full, w_stacked, b_pad, *, apply_relu):
    n_pad = a_pad.shape[0]
    h_dim = h_full.shape[1]
    cost = pl.CostEstimate(
        flops=2 * n_pad * n_pad * h_dim + 2 * n_pad * (2 * h_dim) * h_dim,
        transcendentals=0,
        bytes_accessed=4 * (n_pad * n_pad + 2 * n_pad * h_dim
                            + 2 * h_dim * h_dim + h_dim),
    )
    kernel = functools.partial(sage_kernel, tn=TN, apply_relu=apply_relu,
                               agg_dtype=AGG_DTYPE)
    return pl.pallas_call(
        kernel,
        out_shape=jax.ShapeDtypeStruct((n_pad, h_dim), jnp.float32),
        grid_spec=pltpu.PrefetchScalarGridSpec(
            num_scalar_prefetch=0,
            grid=(n_pad // TN,),
            in_specs=[
                pl.BlockSpec((TN, n_pad), lambda i: (i, 0)),        # A row stripe
                pl.BlockSpec((n_pad, h_dim), lambda i: (0, 0)),     # full H
                pl.BlockSpec((2 * h_dim, h_dim), lambda i: (0, 0)),  # stacked W
                pl.BlockSpec((1, h_dim), lambda i: (0, 0)),         # bias
            ],
            out_specs=pl.BlockSpec((TN, h_dim), lambda i: (i, 0)),
        ),
        compiler_params=_compiler_params(),
        cost_estimate=cost,
    )(a_pad, h_full, w_stacked, b_pad)


# ----------------------------------------------------------------------------
# Kernel 3: classifier with fused edge gather.
# edge_label_index is scalar-prefetched into SMEM; node embeddings stay
# VMEM-resident; output is a lane-dense (1, TE) block per grid step.
# ----------------------------------------------------------------------------
def edge_classifier_kernel(eli_ref, emb_ref, o_ref, prod_scr):
    blk = pl.program_id(0)
    te, h_dim = prod_scr.shape

    def body(e, carry):
        col = blk * te + e
        s = eli_ref[0, col]
        t = eli_ref[1, col]
        prod_scr[pl.ds(e, 1), :] = emb_ref[pl.ds(s, 1), :] * emb_ref[pl.ds(t, 1), :]
        return carry

    lax.fori_loop(0, te, body, 0)
    ones_row = jnp.ones((1, h_dim), jnp.float32)
    # row-sum over hidden, emitted lane-dense (edges on lanes)
    o_ref[...] = jnp.dot(ones_row, prod_scr[...].T,
                         preferred_element_type=jnp.float32)


def classifier_call(eli_pad, node_emb):
    n_pad, h_dim = node_emb.shape
    e_pad = eli_pad.shape[1]
    return pl.pallas_call(
        edge_classifier_kernel,
        out_shape=jax.ShapeDtypeStruct((1, e_pad), jnp.float32),
        grid_spec=pltpu.PrefetchScalarGridSpec(
            num_scalar_prefetch=1,
            grid=(e_pad // TE,),
            in_specs=[pl.BlockSpec((n_pad, h_dim), lambda b, eli: (0, 0))],
            out_specs=pl.BlockSpec((1, TE), lambda b, eli: (0, b)),
            scratch_shapes=[pltpu.VMEM((TE, h_dim), jnp.float32)],
        ),
        compiler_params=_compiler_params(),
    )(eli_pad, node_emb)


# ----------------------------------------------------------------------------
# Glue
# ----------------------------------------------------------------------------
def build_mean_adjacency(edge_index, n_pad):
    # PyG flow: message from source j (edge_index[0]) to target i (edge_index[1]);
    # A_mean[i, j] = 1/deg_in(i) if edge j->i. Padded rows/cols stay zero.
    src, dst = edge_index[0], edge_index[1]
    a = jnp.zeros((n_pad, n_pad), jnp.float32)
    a = a.at[dst, src].add(1.0)
    deg = a.sum(axis=-1, keepdims=True)
    return a / jnp.maximum(deg, 1.0)


def model_forward(x, edge_index, edge_label_index, params):
    n, f = x.shape
    hidden = params["w_lin"].shape[1]
    n_pad = _round_up(max(n, 1), max(TN, LANE))
    f_pad = _round_up(f, LANE)
    h_pad = _round_up(hidden, LANE)

    x_p = _pad_axis(_pad_axis(x, n_pad, 0), f_pad, 1)
    a_p = build_mean_adjacency(edge_index, n_pad)

    w_lin = _pad_axis(_pad_axis(params["w_lin"], f_pad, 0), h_pad, 1)
    b_lin = _pad_axis(params["b_lin"], h_pad, 1)

    def stack(wl, wr):
        wl = _pad_axis(_pad_axis(wl, h_pad, 0), h_pad, 1)
        wr = _pad_axis(_pad_axis(wr, h_pad, 0), h_pad, 1)
        return jnp.concatenate([wl, wr], axis=0)            # (2*h_pad, h_pad)

    w1 = stack(params["w1_l"], params["w1_r"])
    b1 = _pad_axis(params["b1_l"], h_pad, 1)
    w2 = stack(params["w2_l"], params["w2_r"])
    b2 = _pad_axis(params["b2_l"], h_pad, 1)

    h = linear_call(x_p, w_lin, b_lin)                       # (n_pad, h_pad)
    h1 = sage_call(a_p, h, w1, b1, apply_relu=True)
    h2 = sage_call(a_p, h1, w2, b2, apply_relu=False)

    e = edge_label_index.shape[1]
    e_pad = _round_up(max(e, 1), TE)
    eli_p = _pad_axis(edge_label_index.astype(jnp.int32), e_pad, 1)
    preds = classifier_call(eli_p, h2)                       # (1, e_pad)
    return preds[0, :e]


def reference_forward(x, edge_index, edge_label_index, params):
    n = x.shape[0]
    src, dst = edge_index[0], edge_index[1]
    a = jnp.zeros((n, n), jnp.float32).at[dst, src].add(1.0)
    deg = a.sum(axis=-1, keepdims=True)
    a = a / jnp.maximum(deg, 1.0)
    h = x @ params["w_lin"] + params["b_lin"]
    h1 = jnp.maximum((a @ h) @ params["w1_l"] + params["b1_l"] + h @ params["w1_r"], 0.0)
    h2 = (a @ h1) @ params["w2_l"] + params["b2_l"] + h1 @ params["w2_r"]
    s = h2[edge_label_index[0]]
    t = h2[edge_label_index[1]]
    return jnp.sum(s * t, axis=-1)


if __name__ == "__main__":
    key = jax.random.PRNGKey(0)
    num_nodes, num_features, hidden = 16, 8, 32
    num_edges, num_label_edges = 24, 10

    keys = jax.random.split(key, 12)
    x = jax.random.normal(keys[0], (num_nodes, num_features), jnp.float32)
    edge_index = jax.random.randint(keys[1], (2, num_edges), 0, num_nodes, jnp.int32)
    edge_label_index = jax.random.randint(keys[2], (2, num_label_edges), 0, num_nodes,
                                          jnp.int32)

    def winit(k, shape, scale=0.1):
        return scale * jax.random.normal(k, shape, jnp.float32)

    params = {
        "w_lin": winit(keys[3], (num_features, hidden)),
        "b_lin": winit(keys[4], (1, hidden)),
        "w1_l": winit(keys[5], (hidden, hidden)),
        "b1_l": winit(keys[6], (1, hidden)),
        "w1_r": winit(keys[7], (hidden, hidden)),
        "w2_l": winit(keys[8], (hidden, hidden)),
        "b2_l": winit(keys[9], (1, hidden)),
        "w2_r": winit(keys[10], (hidden, hidden)),
    }

    preds = jax.jit(model_forward)(x, edge_index, edge_label_index, params)
    jax.block_until_ready(preds)

    ref = reference_forward(x, edge_index, edge_label_index, params)
    assert preds.shape == (num_label_edges,)
    assert jnp.allclose(preds, ref, atol=1e-4, rtol=1e-4), (preds, ref)
    print("KERNEL_OK")
</pallas_src>

<mosaic_0001>
module attributes {stable_mosaic.version = 11 : i64} {
  func.func @lin_kernel(%arg0: i32, %arg1: memref<128x128xf32, #tpu.memory_space<vmem>>, %arg2: memref<128x128xf32, #tpu.memory_space<vmem>>, %arg3: memref<1x128xf32, #tpu.memory_space<vmem>>, %arg4: memref<128x128xf32, #tpu.memory_space<vmem>>) attributes {dimension_semantics = [#tpu.dimension_semantics<parallel>], iteration_bounds = array<i64: 1>, scalar_prefetch = 0 : i64, scratch_operands = 0 : i64, tpu.core_type = #tpu.core_type<tc>, window_params = [{transform_indices = @transform_0, window_bounds = array<i64: 128, 128>}, {pipeline_mode = #tpu.pipeline_mode<synchronous>, transform_indices = @transform_1, window_bounds = array<i64: 128, 128>}, {pipeline_mode = #tpu.pipeline_mode<synchronous>, transform_indices = @transform_2, window_bounds = array<i64: 1, 128>}, {transform_indices = @transform_3, window_bounds = array<i64: 128, 128>}]} {
    %c0 = arith.constant 0 : index
    %c0_0 = arith.constant 0 : index
    %0 = vector.load %arg1[%c0, %c0_0] : memref<128x128xf32, #tpu.memory_space<vmem>>, vector<128x128xf32>
    %c0_1 = arith.constant 0 : index
    %c0_2 = arith.constant 0 : index
    %1 = vector.load %arg2[%c0_1, %c0_2] : memref<128x128xf32, #tpu.memory_space<vmem>>, vector<128x128xf32>
    %cst = arith.constant dense<0.000000e+00> : vector<128x128xf32>
    %2 = tpu.matmul %0, %1, %cst {dimension_numbers = #tpu.dot_dimension_numbers<[1], [0], [0], [1], [0, 0, 1, 1], [], []>} : vector<128x128xf32>, vector<128x128xf32>, vector<128x128xf32> -> vector<128x128xf32>
    %c0_3 = arith.constant 0 : index
    %c0_4 = arith.constant 0 : index
    %3 = vector.load %arg3[%c0_3, %c0_4] : memref<1x128xf32, #tpu.memory_space<vmem>>, vector<1x128xf32>
    %4 = vector.broadcast %3 : vector<1x128xf32> to vector<128x128xf32>
    %5 = arith.addf %2, %4 : vector<128x128xf32>
    %c0_5 = arith.constant 0 : index
    %c0_6 = arith.constant 0 : index
    %6 = vector.load %arg4[%c0_5, %c0_6] : memref<128x128xf32, #tpu.memory_space<vmem>>, vector<128x128xf32>
    tpu.vector_store %arg4[%c0_5, %c0_6], %5 {strides = array<i32>} : memref<128x128xf32, #tpu.memory_space<vmem>>, vector<128x128xf32>,
    return
  }
  func.func @transform_0(%arg0: i32) -> (i32, i32) {
    %c0_i32 = arith.constant 0 : i32
    %c0_i32_0 = arith.constant 0 : i32
    return %arg0, %c0_i32 : i32, i32
  }
  func.func @transform_1(%arg0: i32) -> (i32, i32) {
    %c0_i32 = arith.constant 0 : i32
    %c0_i32_0 = arith.constant 0 : i32
    %c0_i32_1 = arith.constant 0 : i32
    return %c0_i32, %c0_i32_0 : i32, i32
  }
  func.func @transform_2(%arg0: i32) -> (i32, i32) {
    %c0_i32 = arith.constant 0 : i32
    %c0_i32_0 = arith.constant 0 : i32
    %c0_i32_1 = arith.constant 0 : i32
    return %c0_i32, %c0_i32_0 : i32, i32
  }
  func.func @transform_3(%arg0: i32) -> (i32, i32) {
    %c0_i32 = arith.constant 0 : i32
    %c0_i32_0 = arith.constant 0 : i32
    return %arg0, %c0_i32 : i32, i32
  }
}

module attributes {stable_mosaic.version = 11 : i64} {
  func.func @sage_kernel(%arg0: i32, %arg1: memref<128x128xf32, #tpu.memory_space<vmem>>, %arg2: memref<128x128xf32, #tpu.memory_space<vmem>>, %arg3: memref<256x128xf32, #tpu.memory_space<vmem>>, %arg4: memref<1x128xf32, #tpu.memory_space<vmem>>, %arg5: memref<128x128xf32, #tpu.memory_space<vmem>>) attributes {dimension_semantics = [#tpu.dimension_semantics<parallel>], iteration_bounds = array<i64: 1>, scalar_prefetch = 0 : i64, scratch_operands = 0 : i64, tpu.core_type = #tpu.core_type<tc>, window_params = [{transform_indices = @transform_0, window_bounds = array<i64: 128, 128>}, {pipeline_mode = #tpu.pipeline_mode<synchronous>, transform_indices = @transform_1, window_bounds = array<i64: 128, 128>}, {pipeline_mode = #tpu.pipeline_mode<synchronous>, transform_indices = @transform_2, window_bounds = array<i64: 256, 128>}, {pipeline_mode = #tpu.pipeline_mode<synchronous>, transform_indices = @transform_3, window_bounds = array<i64: 1, 128>}, {transform_indices = @transform_4, window_bounds = array<i64: 128, 128>}]} {
    %c128_i32 = arith.constant 128 : i32
    %0 = arith.muli %arg0, %c128_i32 : i32
    %1 = tpu.assume_multiple %0, 128 : i32
    %2 = arith.index_cast %1 : i32 to index
    %c0 = arith.constant 0 : index
    %3 = vector.load %arg2[%2, %c0] : memref<128x128xf32, #tpu.memory_space<vmem>>, vector<128x128xf32>
    %c0_0 = arith.constant 0 : index
    %c0_1 = arith.constant 0 : index
    %4 = vector.load %arg1[%c0_0, %c0_1] : memref<128x128xf32, #tpu.memory_space<vmem>>, vector<128x128xf32>
    %c0_2 = arith.constant 0 : index
    %c0_3 = arith.constant 0 : index
    %5 = vector.load %arg2[%c0_2, %c0_3] : memref<128x128xf32, #tpu.memory_space<vmem>>, vector<128x128xf32>
    %cst = arith.constant dense<0.000000e+00> : vector<128x128xf32>
    %6 = tpu.matmul %4, %5, %cst {dimension_numbers = #tpu.dot_dimension_numbers<[1], [0], [0], [1], [0, 0, 1, 1], [], []>} : vector<128x128xf32>, vector<128x128xf32>, vector<128x128xf32> -> vector<128x128xf32>
    %7 = tpu.concatenate %6, %3 in 1 : vector<128x128xf32>, vector<128x128xf32> -> vector<128x256xf32>
    %c0_4 = arith.constant 0 : index
    %c0_5 = arith.constant 0 : index
    %8 = vector.load %arg3[%c0_4, %c0_5] : memref<256x128xf32, #tpu.memory_space<vmem>>, vector<256x128xf32>
    %cst_6 = arith.constant dense<0.000000e+00> : vector<128x128xf32>
    %9 = tpu.matmul %7, %8, %cst_6 {dimension_numbers = #tpu.dot_dimension_numbers<[1], [0], [0], [1], [0, 0, 1, 1], [], []>} : vector<128x256xf32>, vector<256x128xf32>, vector<128x128xf32> -> vector<128x128xf32>
    %c0_7 = arith.constant 0 : index
    %c0_8 = arith.constant 0 : index
    %10 = vector.load %arg4[%c0_7, %c0_8] : memref<1x128xf32, #tpu.memory_space<vmem>>, vector<1x128xf32>
    %11 = vector.broadcast %10 : vector<1x128xf32> to vector<128x128xf32>
    %12 = arith.addf %9, %11 : vector<128x128xf32>
    %cst_9 = arith.constant 0.000000e+00 : f32
    %13 = vector.broadcast %cst_9 : f32 to vector<128x128xf32>
    %14 = arith.maximumf %12, %13 : vector<128x128xf32>
    %c0_10 = arith.constant 0 : index
    %c0_11 = arith.constant 0 : index
    %15 = vector.load %arg5[%c0_10, %c0_11] : memref<128x128xf32, #tpu.memory_space<vmem>>, vector<128x128xf32>
    tpu.vector_store %arg5[%c0_10, %c0_11], %14 {strides = array<i32>} : memref<128x128xf32, #tpu.memory_space<vmem>>, vector<128x128xf32>,
    return
  }
  func.func @transform_0(%arg0: i32) -> (i32, i32) {
    %c0_i32 = arith.constant 0 : i32
    %c0_i32_0 = arith.constant 0 : i32
    return %arg0, %c0_i32 : i32, i32
  }
  func.func @transform_1(%arg0: i32) -> (i32, i32) {
    %c0_i32 = arith.constant 0 : i32
    %c0_i32_0 = arith.constant 0 : i32
    %c0_i32_1 = arith.constant 0 : i32
    return %c0_i32, %c0_i32_0 : i32, i32
  }
  func.func @transform_2(%arg0: i32) -> (i32, i32) {
    %c0_i32 = arith.constant 0 : i32
    %c0_i32_0 = arith.constant 0 : i32
    %c0_i32_1 = arith.constant 0 : i32
    return %c0_i32, %c0_i32_0 : i32, i32
  }
  func.func @transform_3(%arg0: i32) -> (i32, i32) {
    %c0_i32 = arith.constant 0 : i32
    %c0_i32_0 = arith.constant 0 : i32
    %c0_i32_1 = arith.constant 0 : i32
    return %c0_i32, %c0_i32_0 : i32, i32
  }
  func.func @transform_4(%arg0: i32) -> (i32, i32) {
    %c0_i32 = arith.constant 0 : i32
    %c0_i32_0 = arith.constant 0 : i32
    return %arg0, %c0_i32 : i32, i32
  }
}

module attributes {stable_mosaic.version = 11 : i64} {
  func.func @sage_kernel(%arg0: i32, %arg1: memref<128x128xf32, #tpu.memory_space<vmem>>, %arg2: memref<128x128xf32, #tpu.memory_space<vmem>>, %arg3: memref<256x128xf32, #tpu.memory_space<vmem>>, %arg4: memref<1x128xf32, #tpu.memory_space<vmem>>, %arg5: memref<128x128xf32, #tpu.memory_space<vmem>>) attributes {dimension_semantics = [#tpu.dimension_semantics<parallel>], iteration_bounds = array<i64: 1>, scalar_prefetch = 0 : i64, scratch_operands = 0 : i64, tpu.core_type = #tpu.core_type<tc>, window_params = [{transform_indices = @transform_0, window_bounds = array<i64: 128, 128>}, {pipeline_mode = #tpu.pipeline_mode<synchronous>, transform_indices = @transform_1, window_bounds = array<i64: 128, 128>}, {pipeline_mode = #tpu.pipeline_mode<synchronous>, transform_indices = @transform_2, window_bounds = array<i64: 256, 128>}, {pipeline_mode = #tpu.pipeline_mode<synchronous>, transform_indices = @transform_3, window_bounds = array<i64: 1, 128>}, {transform_indices = @transform_4, window_bounds = array<i64: 128, 128>}]} {
    %c128_i32 = arith.constant 128 : i32
    %0 = arith.muli %arg0, %c128_i32 : i32
    %1 = tpu.assume_multiple %0, 128 : i32
    %2 = arith.index_cast %1 : i32 to index
    %c0 = arith.constant 0 : index
    %3 = vector.load %arg2[%2, %c0] : memref<128x128xf32, #tpu.memory_space<vmem>>, vector<128x128xf32>
    %c0_0 = arith.constant 0 : index
    %c0_1 = arith.constant 0 : index
    %4 = vector.load %arg1[%c0_0, %c0_1] : memref<128x128xf32, #tpu.memory_space<vmem>>, vector<128x128xf32>
    %c0_2 = arith.constant 0 : index
    %c0_3 = arith.constant 0 : index
    %5 = vector.load %arg2[%c0_2, %c0_3] : memref<128x128xf32, #tpu.memory_space<vmem>>, vector<128x128xf32>
    %cst = arith.constant dense<0.000000e+00> : vector<128x128xf32>
    %6 = tpu.matmul %4, %5, %cst {dimension_numbers = #tpu.dot_dimension_numbers<[1], [0], [0], [1], [0, 0, 1, 1], [], []>} : vector<128x128xf32>, vector<128x128xf32>, vector<128x128xf32> -> vector<128x128xf32>
    %7 = tpu.concatenate %6, %3 in 1 : vector<128x128xf32>, vector<128x128xf32> -> vector<128x256xf32>
    %c0_4 = arith.constant 0 : index
    %c0_5 = arith.constant 0 : index
    %8 = vector.load %arg3[%c0_4, %c0_5] : memref<256x128xf32, #tpu.memory_space<vmem>>, vector<256x128xf32>
    %cst_6 = arith.constant dense<0.000000e+00> : vector<128x128xf32>
    %9 = tpu.matmul %7, %8, %cst_6 {dimension_numbers = #tpu.dot_dimension_numbers<[1], [0], [0], [1], [0, 0, 1, 1], [], []>} : vector<128x256xf32>, vector<256x128xf32>, vector<128x128xf32> -> vector<128x128xf32>
    %c0_7 = arith.constant 0 : index
    %c0_8 = arith.constant 0 : index
    %10 = vector.load %arg4[%c0_7, %c0_8] : memref<1x128xf32, #tpu.memory_space<vmem>>, vector<1x128xf32>
    %11 = vector.broadcast %10 : vector<1x128xf32> to vector<128x128xf32>
    %12 = arith.addf %9, %11 : vector<128x128xf32>
    %c0_9 = arith.constant 0 : index
    %c0_10 = arith.constant 0 : index
    %13 = vector.load %arg5[%c0_9, %c0_10] : memref<128x128xf32, #tpu.memory_space<vmem>>, vector<128x128xf32>
    tpu.vector_store %arg5[%c0_9, %c0_10], %12 {strides = array<i32>} : memref<128x128xf32, #tpu.memory_space<vmem>>, vector<128x128xf32>,
    return
  }
  func.func @transform_0(%arg0: i32) -> (i32, i32) {
    %c0_i32 = arith.constant 0 : i32
    %c0_i32_0 = arith.constant 0 : i32
    return %arg0, %c0_i32 : i32, i32
  }
  func.func @transform_1(%arg0: i32) -> (i32, i32) {
    %c0_i32 = arith.constant 0 : i32
    %c0_i32_0 = arith.constant 0 : i32
    %c0_i32_1 = arith.constant 0 : i32
    return %c0_i32, %c0_i32_0 : i32, i32
  }
  func.func @transform_2(%arg0: i32) -> (i32, i32) {
    %c0_i32 = arith.constant 0 : i32
    %c0_i32_0 = arith.constant 0 : i32
    %c0_i32_1 = arith.constant 0 : i32
    return %c0_i32, %c0_i32_0 : i32, i32
  }
  func.func @transform_3(%arg0: i32) -> (i32, i32) {
    %c0_i32 = arith.constant 0 : i32
    %c0_i32_0 = arith.constant 0 : i32
    %c0_i32_1 = arith.constant 0 : i32
    return %c0_i32, %c0_i32_0 : i32, i32
  }
  func.func @transform_4(%arg0: i32) -> (i32, i32) {
    %c0_i32 = arith.constant 0 : i32
    %c0_i32_0 = arith.constant 0 : i32
    return %arg0, %c0_i32 : i32, i32
  }
}

module attributes {stable_mosaic.version = 11 : i64} {
  func.func @edge_classifier_kernel(%arg0: i32, %arg1: memref<2x128xi32, #tpu.memory_space<smem>>, %arg2: memref<128x128xf32, #tpu.memory_space<vmem>>, %arg3: memref<1x128xf32, #tpu.memory_space<vmem>>, %arg4: memref<128x128xf32, #tpu.memory_space<vmem>>) attributes {dimension_semantics = [#tpu.dimension_semantics<parallel>], iteration_bounds = array<i64: 1>, scalar_prefetch = 1 : i64, scratch_operands = 1 : i64, tpu.core_type = #tpu.core_type<tc>, window_params = [{pipeline_mode = #tpu.pipeline_mode<synchronous>, transform_indices = @transform_0, window_bounds = array<i64: 128, 128>}, {transform_indices = @transform_1, window_bounds = array<i64: 1, 128>}]} {
    %c0_i32 = arith.constant 0 : i32
    %c128_i32 = arith.constant 128 : i32
    %0 = arith.addi %c0_i32, %c128_i32 : i32
    %c1_i32 = arith.constant 1 : i32
    scf.for %arg5 = %c0_i32 to %0 step %c1_i32  : i32 {
      %c128_i32_5 = arith.constant 128 : i32
      %6 = arith.muli %arg0, %c128_i32_5 : i32
      %7 = arith.addi %6, %arg5 : i32
      %c0_6 = arith.constant 0 : index
      %8 = arith.index_cast %7 : i32 to index
      %9 = memref.load %arg1[%c0_6, %8] : memref<2x128xi32, #tpu.memory_space<smem>>
      %c1 = arith.constant 1 : index
      %10 = arith.index_cast %7 : i32 to index
      %11 = memref.load %arg1[%c1, %10] : memref<2x128xi32, #tpu.memory_space<smem>>
      %12 = arith.index_cast %9 : i32 to index
      %c0_7 = arith.constant 0 : index
      %13 = vector.load %arg2[%12, %c0_7] : memref<128x128xf32, #tpu.memory_space<vmem>>, vector<1x128xf32>
      %14 = arith.index_cast %11 : i32 to index
      %c0_8 = arith.constant 0 : index
      %15 = vector.load %arg2[%14, %c0_8] : memref<128x128xf32, #tpu.memory_space<vmem>>, vector<1x128xf32>
      %16 = arith.mulf %13, %15 : vector<1x128xf32>
      %17 = arith.index_cast %arg5 : i32 to index
      %c0_9 = arith.constant 0 : index
      %18 = vector.load %arg4[%17, %c0_9] : memref<128x128xf32, #tpu.memory_space<vmem>>, vector<1x128xf32>
      tpu.vector_store %arg4[%17, %c0_9], %16 {strides = array<i32>} : memref<128x128xf32, #tpu.memory_space<vmem>>, vector<1x128xf32>,
    }
    %c128_i32_0 = arith.constant 128 : i32
    %cst = arith.constant 1.000000e+00 : f32
    %1 = vector.broadcast %cst : f32 to vector<1x128xf32>
    %c0 = arith.constant 0 : index
    %c0_1 = arith.constant 0 : index
    %2 = vector.load %arg4[%c0, %c0_1] : memref<128x128xf32, #tpu.memory_space<vmem>>, vector<128x128xf32>
    %3 = tpu.transpose %2, [1, 0] : vector<128x128xf32> -> vector<128x128xf32>
    %cst_2 = arith.constant dense<0.000000e+00> : vector<1x128xf32>
    %4 = tpu.matmul %1, %3, %cst_2 {dimension_numbers = #tpu.dot_dimension_numbers<[1], [0], [0], [1], [0, 0, 1, 1], [], []>} : vector<1x128xf32>, vector<128x128xf32>, vector<1x128xf32> -> vector<1x128xf32>
    %c0_3 = arith.constant 0 : index
    %c0_4 = arith.constant 0 : index
    %5 = vector.load %arg3[%c0_3, %c0_4] : memref<1x128xf32, #tpu.memory_space<vmem>>, vector<1x128xf32>
    tpu.vector_store %arg3[%c0_3, %c0_4], %4 {strides = array<i32>} : memref<1x128xf32, #tpu.memory_space<vmem>>, vector<1x128xf32>,
    return
  }
  func.func @transform_0(%arg0: i32, %arg1: memref<2x128xi32, #tpu.memory_space<smem>>) -> (i32, i32) {
    %c0_i32 = arith.constant 0 : i32
    %c0_i32_0 = arith.constant 0 : i32
    %c0_i32_1 = arith.constant 0 : i32
    return %c0_i32, %c0_i32_0 : i32, i32
  }
  func.func @transform_1(%arg0: i32, %arg1: memref<2x128xi32, #tpu.memory_space<smem>>) -> (i32, i32) {
    %c0_i32 = arith.constant 0 : i32
    %c0_i32_0 = arith.constant 0 : i32
    return %c0_i32, %arg0 : i32, i32
  }
}

</mosaic_0001>

<bundles_post_ra>
// kernel: model_forward.4
= control target key start
LH: loop header
LB: loop body
LE: loop exit
PB: predicated region body
PF: predicated region fallthrough
CT: control target
= control target key end

     0   :  { %s522_s1 = inlined_call_operand.vmem [shape: f32[128,128], index: 1, kind: input, shape index: {}]   ;;  %s523_s0 = inlined_call_operand.vmem [shape: f32[128,128], index: 0, kind: input, shape index: {}]   ;;  %s524_s2 = inlined_call_operand.vmem [shape: f32[1,128], index: 2, kind: input, shape index: {}]   ;;  %s525_s3 = inlined_call_operand.vmem [shape: f32[128,128], index: 3, kind: output, shape index: {}]  }
   0x1   :  { %v30_v0 = vld [vmem:[%s522_s1] sm:$0xff]  ;;  %v31_v1 = vld [vmem:[%s522_s1 + $0x8] sm:$0xff]  ;;  %v32_v2 = vld [vmem:[%s522_s1 + $0x10] sm:$0xff] }
   0x2   :  { %v307_v3 = vpack.c.bf16 %v31_v1, %v30_v0  ;;  %v33_v4 = vld [vmem:[%s522_s1 + $0x18] sm:$0xff]  ;;  %v34_v6 = vld [vmem:[%s522_s1 + $0x20] sm:$0xff]  ;;  %v35_v7 = vld [vmem:[%s522_s1 + $0x28] sm:$0xff] }
   0x3   :  { %v311_v5 = vpack.c.bf16 %v33_v4, %v32_v2  ;;  %v315_v8 = vpack.c.bf16 %v35_v7, %v34_v6  ;;  %v14_v9 = vld [vmem:[%s523_s0] sm:$0xff]  ;;  %v36_v11 = vld [vmem:[%s522_s1 + $0x30] sm:$0xff]  ;;  %v37_v12 = vld [vmem:[%s522_s1 + $0x38] sm:$0xff] }
   0x4   :  { %308 = vmatprep.subr.bf16.mxu0 %v307_v3  ;;  %339 = vmatprep.subr.bf16.mxu1 %v307_v3  ;;  %v22_v10 = vld [vmem:[%s523_s0 + $0x40] sm:$0xff]  ;;  %v319_v13 = vpack.c.bf16 %v37_v12, %v36_v11  ;;  %v39_v15 = vld [vmem:[%s522_s1 + $0x48] sm:$0xff]  ;;  %v40_v17 = vld [vmem:[%s522_s1 + $0x50] sm:$0xff] }
   0x5   :  { %310 = vmatpush3.bf16.msra.mxu0 %v307_v3  ;;  %347 = vmatpush3.bf16.msra.mxu1 %v307_v3  ;;  %v38_v14 = vld [vmem:[%s522_s1 + $0x40] sm:$0xff]  ;;  %v41_v18 = vld [vmem:[%s522_s1 + $0x58] sm:$0xff]  ;;  %v43_v21 = vld [vmem:[%s522_s1 + $0x68] sm:$0xff] }
   0x6   :  { %312 = vmatprep.subr.bf16.mxu0 %v311_v5  ;;  %340 = vmatprep.subr.bf16.mxu1 %v311_v5  ;;  %v323_v16 = vpack.c.bf16 %v39_v15, %v38_v14  ;;  %v327_v19 = vpack.c.bf16 %v41_v18, %v40_v17  ;;  %v42_v20 = vld [vmem:[%s522_s1 + $0x60] sm:$0xff]  ;;  %v44_v23 = vld [vmem:[%s522_s1 + $0x70] sm:$0xff]  ;;  %v45_v24 = vld [vmem:[%s522_s1 + $0x78] sm:$0xff] }
   0x7   :  { %283 = vmatprep.mubr.f32.mxu0 %v14_v9  ;;  %295 = vmatprep.mubr.f32.mxu1 %v22_v10  ;;  %v331_v22 = vpack.c.bf16 %v43_v21, %v42_v20  ;;  %v335_v25 = vpack.c.bf16 %v45_v24, %v44_v23  ;;  %v15_v26 = vld [vmem:[%s523_s0 + $0x8] sm:$0xff]  ;;  %v16_v28 = vld [vmem:[%s523_s0 + $0x10] sm:$0xff]  ;;  %v17_v30 = vld [vmem:[%s523_s0 + $0x18] sm:$0xff] }
   0x8   :  { %v23_v27 = vld [vmem:[%s523_s0 + $0x48] sm:$0xff]  ;;  %v24_v29 = vld [vmem:[%s523_s0 + $0x50] sm:$0xff]  ;;  %v25_v31 = vld [vmem:[%s523_s0 + $0x58] sm:$0xff] }
   0x9   :  { %314 = vmatpush3.bf16.msra.mxu0 %v311_v5  ;;  %348 = vmatpush3.bf16.msra.mxu1 %v311_v5  ;;  %v18_v32 = vld [vmem:[%s523_s0 + $0x20] sm:$0xff]  ;;  %v19_v34 = vld [vmem:[%s523_s0 + $0x28] sm:$0xff]  ;;  %v20_v36 = vld [vmem:[%s523_s0 + $0x30] sm:$0xff] }
   0xa   :  { %316 = vmatprep.subr.bf16.mxu0 %v315_v8  ;;  %341 = vmatprep.subr.bf16.mxu1 %v315_v8  ;;  %v26_v33 = vld [vmem:[%s523_s0 + $0x60] sm:$0xff]  ;;  %v27_v35 = vld [vmem:[%s523_s0 + $0x68] sm:$0xff]  ;;  %v28_v37 = vld [vmem:[%s523_s0 + $0x70] sm:$0xff] }
   0xb   :  { %v21_v38 = vld [vmem:[%s523_s0 + $0x38] sm:$0xff]  ;;  %v218_v40 = vld [vmem:[%s524_s2] ss:$0 sm:$0xff] }
   0xc   :  { %v29_v39 = vld [vmem:[%s523_s0 + $0x78] sm:$0xff] }
   0xd   :  { %318 = vmatpush3.bf16.msra.mxu0 %v315_v8  ;;  %349 = vmatpush3.bf16.msra.mxu1 %v315_v8 }
   0xe   :  { %320 = vmatprep.subr.bf16.mxu0 %v319_v13  ;;  %342 = vmatprep.subr.bf16.mxu1 %v319_v13 }
  0x11   :  { %322 = vmatpush3.bf16.msra.mxu0 %v319_v13  ;;  %350 = vmatpush3.bf16.msra.mxu1 %v319_v13 }
  0x12   :  { %324 = vmatprep.subr.bf16.mxu0 %v323_v16  ;;  %343 = vmatprep.subr.bf16.mxu1 %v323_v16 }
  0x15   :  { %326 = vmatpush3.bf16.msra.mxu0 %v323_v16  ;;  %351 = vmatpush3.bf16.msra.mxu1 %v323_v16 }
  0x16   :  { %328 = vmatprep.subr.bf16.mxu0 %v327_v19  ;;  %344 = vmatprep.subr.bf16.mxu1 %v327_v19 }
  0x19   :  { %330 = vmatpush3.bf16.msra.mxu0 %v327_v19  ;;  %352 = vmatpush3.bf16.msra.mxu1 %v327_v19 }
  0x1a   :  { %332 = vmatprep.subr.bf16.mxu0 %v331_v22  ;;  %345 = vmatprep.subr.bf16.mxu1 %v331_v22 }
  0x1d   :  { %334 = vmatpush3.bf16.msra.mxu0 %v331_v22  ;;  %353 = vmatpush3.bf16.msra.mxu1 %v331_v22 }
  0x1e   :  { %336 = vmatprep.subr.bf16.mxu0 %v335_v25  ;;  %346 = vmatprep.subr.bf16.mxu1 %v335_v25 }
  0x21   :  { %338 = vmatpush3.bf16.msra.mxu0 %v335_v25  ;;  %354 = vmatpush3.bf16.msra.mxu1 %v335_v25 }
  0x24   :  { %284 = vmatmul.mubr.f32.vlgmr.msra.gmra.mrb[0].mxu0 %v15_v26  ;;  %296 = vmatmul.mubr.f32.vlgmr.msra.gmra.mrb[0].mxu1 %v23_v27 }
  0x25   :  { %286 = vmatprep.mubr.f32.mxu0 %v16_v28  ;;  %298 = vmatprep.mubr.f32.mxu1 %v24_v29 }
  0x28   :  { %287 = vmatmul.mubr.f32.gmra.mrb[2].mxu0 %v17_v30  ;;  %299 = vmatmul.mubr.f32.gmra.mrb[2].mxu1 %v25_v31 }
  0x29   :  { %289 = vmatprep.mubr.f32.mxu0 %v18_v32  ;;  %301 = vmatprep.mubr.f32.mxu1 %v26_v33 }
  0x2c   :  { %290 = vmatmul.mubr.f32.gmra.mrb[4].mxu0 %v19_v34  ;;  %302 = vmatmul.mubr.f32.gmra.mrb[4].mxu1 %v27_v35 }
  0x2d   :  { %292 = vmatprep.mubr.f32.mxu0 %v20_v36  ;;  %304 = vmatprep.mubr.f32.mxu1 %v28_v37 }
  0x30   :  { %293 = vmatmul.mubr.f32.gmra.mrb[6].mxu0 %v21_v38  ;;  %305 = vmatmul.mubr.f32.gmra.mrb[6].mxu1 %v29_v39 }
  0xf7   :  { %v285_v41 = vpop.f32.mrb[0].mxu0  ;;  %v297_v42 = vpop.f32.mrb[0].mxu1 }
  0xf8   :  { %v125_v43 = vadd.f32 %v285_v41, %v218_v40  ;;  %v165_v44 = vadd.f32 %v297_v42, %v218_v40  ;;  %v119_v45 = vpop.f32.mrb[1].mxu0  ;;  %v159_v46 = vpop.f32.mrb[1].mxu1 }
  0xf9   :  { %v120_v47 = vadd.f32 %v218_v40, %v119_v45  ;;  %v160_v48 = vadd.f32 %v218_v40, %v159_v46 }
  0xfa   :  { %199 = vst [vmem:[%s525_s3 + $0x8] sm:$0xff] %v125_v43  ;;  %207 = vst [vmem:[%s525_s3 + $0x48] sm:$0xff] %v165_v44 }
  0xfb   :  { %198 = vst [vmem:[%s525_s3] sm:$0xff] %v120_v47  ;;  %206 = vst [vmem:[%s525_s3 + $0x40] sm:$0xff] %v160_v48  ;;  %v288_v49 = vpop.f32.mrb[2].mxu0  ;;  %v300_v50 = vpop.f32.mrb[2].mxu1 }
  0xfc   :  { %v135_v51 = vadd.f32 %v288_v49, %v218_v40  ;;  %v175_v52 = vadd.f32 %v300_v50, %v218_v40  ;;  %v129_v53 = vpop.f32.mrb[3].mxu0  ;;  %v169_v54 = vpop.f32.mrb[3].mxu1 }
  0xfd   :  { %v130_v55 = vadd.f32 %v218_v40, %v129_v53  ;;  %v170_v56 = vadd.f32 %v218_v40, %v169_v54 }
  0xfe   :  { %201 = vst [vmem:[%s525_s3 + $0x18] sm:$0xff] %v135_v51  ;;  %209 = vst [vmem:[%s525_s3 + $0x58] sm:$0xff] %v175_v52 }
  0xff   :  { %200 = vst [vmem:[%s525_s3 + $0x10] sm:$0xff] %v130_v55  ;;  %208 = vst [vmem:[%s525_s3 + $0x50] sm:$0xff] %v170_v56  ;;  %v291_v57 = vpop.f32.mrb[4].mxu0  ;;  %v303_v58 = vpop.f32.mrb[4].mxu1 }
 0x100   :  { %v145_v59 = vadd.f32 %v291_v57, %v218_v40  ;;  %v185_v60 = vadd.f32 %v303_v58, %v218_v40  ;;  %v139_v61 = vpop.f32.mrb[5].mxu0  ;;  %v179_v62 = vpop.f32.mrb[5].mxu1 }
 0x101   :  { %v140_v63 = vadd.f32 %v218_v40, %v139_v61  ;;  %v180_v0 = vadd.f32 %v218_v40, %v179_v62 }
 0x102   :  { %203 = vst [vmem:[%s525_s3 + $0x28] sm:$0xff] %v145_v59  ;;  %211 = vst [vmem:[%s525_s3 + $0x68] sm:$0xff] %v185_v60 }
 0x103   :  { %202 = vst [vmem:[%s525_s3 + $0x20] sm:$0xff] %v140_v63  ;;  %210 = vst [vmem:[%s525_s3 + $0x60] sm:$0xff] %v180_v0  ;;  %v294_v1 = vpop.f32.mrb[6].mxu0  ;;  %v306_v2 = vpop.f32.mrb[6].mxu1 }
 0x104   :  { %v155_v3 = vadd.f32 %v294_v1, %v218_v40  ;;  %v195_v4 = vadd.f32 %v306_v2, %v218_v40  ;;  %v149_v5 = vpop.f32.mrb[7].mxu0  ;;  %v189_v6 = vpop.f32.mrb[7].mxu1 }
 0x105   :  { %v150_v7 = vadd.f32 %v218_v40, %v149_v5  ;;  %v190_v8 = vadd.f32 %v218_v40, %v189_v6 }
 0x106   :  { %205 = vst [vmem:[%s525_s3 + $0x38] sm:$0xff] %v155_v3  ;;  %213 = vst [vmem:[%s525_s3 + $0x78] sm:$0xff] %v195_v4 }
 0x107   :  { %204 = vst [vmem:[%s525_s3 + $0x30] sm:$0xff] %v150_v7  ;;  %212 = vst [vmem:[%s525_s3 + $0x70] sm:$0xff] %v190_v8 }

// kernel: model_forward.6
= control target key start
LH: loop header
LB: loop body
LE: loop exit
PB: predicated region body
PF: predicated region fallthrough
CT: control target
= control target key end

     0   :  { %s1039_s1 = inlined_call_operand.vmem [shape: f32[128,128], index: 1, kind: input, shape index: {}]   ;;  %s1040_s0 = inlined_call_operand.vmem [shape: f32[128,128], index: 0, kind: input, shape index: {}]   ;;  %s1041_s2 = inlined_call_operand.vmem [shape: f32[256,128], index: 2, kind: input, shape index: {}]   ;;  %s1042_s3 = inlined_call_operand.vmem [shape: f32[1,128], index: 3, kind: input, shape index: {}]   ;;  %s1043_s4 = inlined_call_operand.vmem [shape: f32[128,128], index: 4, kind: output, shape index: {}]  }
   0x1   :  { %v693_v0 = vld [vmem:[%s1039_s1] sm:$0xff]  ;;  %v698_v1 = vld [vmem:[%s1039_s1 + $0x8] sm:$0xff]  ;;  %v703_v2 = vld [vmem:[%s1039_s1 + $0x10] sm:$0xff] }
   0x2   :  { %v585_v3 = vpack.c.bf16 %v698_v1, %v693_v0  ;;  %v710_v4 = vld [vmem:[%s1039_s1 + $0x18] sm:$0xff]  ;;  %v55_v5 = vld [vmem:[%s1039_s1 + $0x20] sm:$0xff]  ;;  %v720_v7 = vld [vmem:[%s1039_s1 + $0x28] sm:$0xff] }
   0x3   :  { %v589_v6 = vpack.c.bf16 %v710_v4, %v703_v2  ;;  %335 = vmatprep.mubr.f32.mxu1 %v55_v5  ;;  %v593_v8 = vpack.c.bf16 %v720_v7, %v55_v5  ;;  %v35_v9 = vld [vmem:[%s1040_s0] sm:$0xff]  ;;  %v729_v10 = vld [vmem:[%s1039_s1 + $0x30] sm:$0xff]  ;;  %v734_v11 = vld [vmem:[%s1039_s1 + $0x38] sm:$0xff] }
   0x4   :  { %586 = vmatprep.subr.bf16.mxu0 %v585_v3  ;;  %561 = vmatprep.mubr.f32.mxu0 %v35_v9  ;;  %v597_v12 = vpack.c.bf16 %v734_v11, %v729_v10  ;;  %v741_v13 = vld [vmem:[%s1039_s1 + $0x40] sm:$0xff]  ;;  %v746_v14 = vld [vmem:[%s1039_s1 + $0x48] sm:$0xff]  ;;  %v230_v20 = vld [vmem:[%s1041_s2 + $0x90] sm:$0xff] }
   0x5   :  { %588 = vmatpush3.bf16.msra.mxu0 %v585_v3  ;;  %v228_v15 = vld [vmem:[%s1041_s2 + $0x80] sm:$0xff]  ;;  %v229_v16 = vld [vmem:[%s1041_s2 + $0x88] sm:$0xff]  ;;  %v231_v21 = vld [vmem:[%s1041_s2 + $0x98] sm:$0xff]  ;;  %v601_v22 = vpack.c.bf16 %v746_v14, %v741_v13 }
   0x6   :  { %590 = vmatprep.subr.bf16.mxu0 %v589_v6  ;;  %v212_v17 = vld [vmem:[%s1041_s2] sm:$0xff]  ;;  %v213_v18 = vld [vmem:[%s1041_s2 + $0x8] sm:$0xff]  ;;  %v760_v19 = vpack.c.bf16 %v229_v16, %v228_v15  ;;  %v773_v23 = vld [vmem:[%s1039_s1 + $0x50] sm:$0xff]  ;;  %v782_v26 = vpack.c.bf16 %v231_v21, %v230_v20 }
   0x7   :  { %v775_v24 = vpack.c.bf16 %v213_v18, %v212_v17  ;;  %v780_v25 = vld [vmem:[%s1039_s1 + $0x58] sm:$0xff]  ;;  %v214_v27 = vld [vmem:[%s1041_s2 + $0x10] sm:$0xff]  ;;  %v232_v29 = vld [vmem:[%s1041_s2 + $0xa0] sm:$0xff] }
   0x8   :  { %v215_v28 = vld [vmem:[%s1041_s2 + $0x18] sm:$0xff]  ;;  %649 = vmatprep.subr.bf16.mxu1 %v760_v19  ;;  %v233_v30 = vld [vmem:[%s1041_s2 + $0xa8] sm:$0xff]  ;;  %v605_v31 = vpack.c.bf16 %v780_v25, %v773_v23  ;;  %v804_v32 = vld [vmem:[%s1039_s1 + $0x60] sm:$0xff] }
   0x9   :  { %592 = vmatpush3.bf16.msra.mxu0 %v589_v6  ;;  %657 = vmatpush3.bf16.msra.mxu1 %v775_v24  ;;  %v806_v33 = vpack.c.bf16 %v215_v28, %v214_v27  ;;  %v811_v34 = vld [vmem:[%s1039_s1 + $0x68] sm:$0xff]  ;;  %v813_v35 = vpack.c.bf16 %v233_v30, %v232_v29  ;;  %v216_v36 = vld [vmem:[%s1041_s2 + $0x20] sm:$0xff]  ;;  %v234_v38 = vld [vmem:[%s1041_s2 + $0xb0] sm:$0xff] }
   0xa   :  { %594 = vmatprep.subr.bf16.mxu0 %v593_v8  ;;  %650 = vmatprep.subr.bf16.mxu1 %v782_v26  ;;  %v217_v37 = vld [vmem:[%s1041_s2 + $0x28] sm:$0xff]  ;;  %v235_v39 = vld [vmem:[%s1041_s2 + $0xb8] sm:$0xff]  ;;  %v609_v40 = vpack.c.bf16 %v811_v34, %v804_v32  ;;  %v834_v41 = vld [vmem:[%s1039_s1 + $0x70] sm:$0xff] }
   0xb   :  { %v836_v42 = vpack.c.bf16 %v217_v37, %v216_v36  ;;  %v841_v43 = vld [vmem:[%s1039_s1 + $0x78] sm:$0xff]  ;;  %v843_v44 = vpack.c.bf16 %v235_v39, %v234_v38  ;;  %v218_v45 = vld [vmem:[%s1041_s2 + $0x30] sm:$0xff]  ;;  %v236_v47 = vld [vmem:[%s1041_s2 + $0xc0] sm:$0xff] }
   0xc   :  { %v219_v46 = vld [vmem:[%s1041_s2 + $0x38] sm:$0xff]  ;;  %v237_v48 = vld [vmem:[%s1041_s2 + $0xc8] sm:$0xff]  ;;  %v613_v49 = vpack.c.bf16 %v841_v43, %v834_v41  ;;  %v220_v52 = vld [vmem:[%s1041_s2 + $0x40] sm:$0xff] }
   0xd   :  { %596 = vmatpush3.bf16.msra.mxu0 %v593_v8  ;;  %658 = vmatpush3.bf16.msra.mxu1 %v806_v33  ;;  %v631_v50 = vpack.c.bf16 %v219_v46, %v218_v45  ;;  %v633_v51 = vpack.c.bf16 %v237_v48, %v236_v47  ;;  %v221_v53 = vld [vmem:[%s1041_s2 + $0x48] sm:$0xff]  ;;  %v238_v54 = vld [vmem:[%s1041_s2 + $0xd0] sm:$0xff]  ;;  %v239_v55 = vld [vmem:[%s1041_s2 + $0xd8] sm:$0xff] }
   0xe   :  { %598 = vmatprep.subr.bf16.mxu0 %v597_v12  ;;  %651 = vmatprep.subr.bf16.mxu1 %v813_v35  ;;  %v635_v56 = vpack.c.bf16 %v221_v53, %v220_v52  ;;  %v637_v57 = vpack.c.bf16 %v239_v55, %v238_v54  ;;  %v222_v58 = vld [vmem:[%s1041_s2 + $0x50] sm:$0xff]  ;;  %v223_v59 = vld [vmem:[%s1041_s2 + $0x58] sm:$0xff]  ;;  %v36_v60 = vld [vmem:[%s1040_s0 + $0x8] sm:$0xff] }
   0xf   :  { %v240_v61 = vld [vmem:[%s1041_s2 + $0xe0] sm:$0xff]  ;;  %v241_v62 = vld [vmem:[%s1041_s2 + $0xe8] sm:$0xff]  ;;  %v37_v63 = vld [vmem:[%s1040_s0 + $0x10] sm:$0xff]  ;;  %v639_v3 = vpack.c.bf16 %v223_v59, %v222_v58 }
  0x10   :  { %v224_v5 = vld [vmem:[%s1041_s2 + $0x60] sm:$0xff]  ;;  %v225_v6 = vld [vmem:[%s1041_s2 + $0x68] sm:$0xff]  ;;  %v641_v8 = vpack.c.bf16 %v241_v62, %v240_v61  ;;  %v38_v9 = vld [vmem:[%s1040_s0 + $0x18] sm:$0xff] }
  0x11   :  { %600 = vmatpush3.bf16.msra.mxu0 %v597_v12  ;;  %659 = vmatpush3.bf16.msra.mxu1 %v836_v42  ;;  %v242_v12 = vld [vmem:[%s1041_s2 + $0xf0] sm:$0xff]  ;;  %v243_v15 = vld [vmem:[%s1041_s2 + $0xf8] sm:$0xff]  ;;  %v39_v16 = vld [vmem:[%s1040_s0 + $0x20] sm:$0xff]  ;;  %v643_v17 = vpack.c.bf16 %v225_v6, %v224_v5 }
  0x12   :  { %602 = vmatprep.subr.bf16.mxu0 %v601_v22  ;;  %652 = vmatprep.subr.bf16.mxu1 %v843_v44  ;;  %v226_v18 = vld [vmem:[%s1041_s2 + $0x70] sm:$0xff]  ;;  %v645_v20 = vpack.c.bf16 %v243_v15, %v242_v12  ;;  %v40_v21 = vld [vmem:[%s1040_s0 + $0x28] sm:$0xff]  ;;  %v43_v27 = vld [vmem:[%s1040_s0 + $0x40] sm:$0xff] }
  0x13   :  { %v44_v28 = vld [vmem:[%s1040_s0 + $0x48] sm:$0xff]  ;;  %v45_v29 = vld [vmem:[%s1040_s0 + $0x50] sm:$0xff]  ;;  %v46_v30 = vld [vmem:[%s1040_s0 + $0x58] sm:$0xff] }
  0x14   :  { %v50_v36 = vld [vmem:[%s1040_s0 + $0x78] sm:$0xff] }
  0x15   :  { %604 = vmatpush3.bf16.msra.mxu0 %v601_v22  ;;  %660 = vmatpush3.bf16.msra.mxu1 %v631_v50  ;;  %v41_v22 = vld [vmem:[%s1040_s0 + $0x30] sm:$0xff] }
  0x16   :  { %606 = vmatprep.subr.bf16.mxu0 %v605_v31  ;;  %653 = vmatprep.subr.bf16.mxu1 %v633_v51 }
  0x19   :  { %608 = vmatpush3.bf16.msra.mxu0 %v605_v31  ;;  %661 = vmatpush3.bf16.msra.mxu1 %v635_v56  ;;  %v47_v31 = vld [vmem:[%s1040_s0 + $0x60] sm:$0xff] }
  0x1a   :  { %610 = vmatprep.subr.bf16.mxu0 %v609_v40  ;;  %654 = vmatprep.subr.bf16.mxu1 %v637_v57 }
  0x1d   :  { %612 = vmatpush3.bf16.msra.mxu0 %v609_v40  ;;  %662 = vmatpush3.bf16.msra.mxu1 %v639_v3 }
  0x1e   :  { %614 = vmatprep.subr.bf16.mxu0 %v613_v49  ;;  %655 = vmatprep.subr.bf16.mxu1 %v641_v8 }
  0x21   :  { %616 = vmatpush3.bf16.msra.mxu0 %v613_v49  ;;  %663 = vmatpush3.bf16.msra.mxu1 %v643_v17 }
  0x22   :  { %618 = vmatprep.subr.bf16.mxu0 %v760_v19  ;;  %v227_v19 = vld [vmem:[%s1041_s2 + $0x78] sm:$0xff]  ;;  %656 = vmatprep.subr.bf16.mxu1 %v645_v20 }
  0x24   :  { %562 = vmatmul.mubr.f32.vlgmr.msra.gmra.mrb[0].mxu0 %v36_v60 }
  0x25   :  { %564 = vmatprep.mubr.f32.mxu0 %v37_v63  ;;  %620 = vmatpush3.bf16.msra.mxu0 %v775_v24  ;;  %v647_v24 = vpack.c.bf16 %v227_v19, %v226_v18 }
  0x26   :  { %622 = vmatprep.subr.bf16.mxu0 %v782_v26  ;;  %v42_v26 = vld [vmem:[%s1040_s0 + $0x38] sm:$0xff] }
  0x27   :  { %664 = vmatpush3.bf16.msra.mxu1 %v647_v24 }
  0x28   :  { %565 = vmatmul.mubr.f32.gmra.mrb[2].mxu0 %v38_v9 }
  0x29   :  { %567 = vmatprep.mubr.f32.mxu0 %v39_v16  ;;  %624 = vmatpush3.bf16.msra.mxu0 %v806_v33  ;;  %v48_v33 = vld [vmem:[%s1040_s0 + $0x68] sm:$0xff] }
  0x2a   :  { %626 = vmatprep.subr.bf16.mxu0 %v813_v35  ;;  %v49_v35 = vld [vmem:[%s1040_s0 + $0x70] sm:$0xff] }
  0x2c   :  { %568 = vmatmul.mubr.f32.gmra.mrb[4].mxu0 %v40_v21 }
  0x2d   :  { %570 = vmatprep.mubr.f32.mxu0 %v41_v22  ;;  %628 = vmatpush3.bf16.msra.mxu0 %v836_v42 }
  0x2e   :  { %630 = vmatprep.subr.bf16.mxu0 %v843_v44 }
  0x30   :  { %571 = vmatmul.mubr.f32.gmra.mrb[6].mxu0 %v42_v26 }
  0x31   :  { %573 = vmatprep.mubr.f32.mxu0 %v43_v27  ;;  %632 = vmatpush3.bf16.msra.mxu0 %v631_v50 }
  0x32   :  { %634 = vmatprep.subr.bf16.mxu0 %v633_v51 }
  0x34   :  { %574 = vmatmul.mubr.f32.gmra.mrb[8].mxu0 %v44_v28 }
  0x35   :  { %576 = vmatprep.mubr.f32.mxu0 %v45_v29  ;;  %636 = vmatpush3.bf16.msra.mxu0 %v635_v56 }
  0x36   :  { %638 = vmatprep.subr.bf16.mxu0 %v637_v57 }
  0x38   :  { %577 = vmatmul.mubr.f32.gmra.mrb[10].mxu0 %v46_v30 }
  0x39   :  { %579 = vmatprep.mubr.f32.mxu0 %v47_v31  ;;  %640 = vmatpush3.bf16.msra.mxu0 %v639_v3 }
  0x3a   :  { %642 = vmatprep.subr.bf16.mxu0 %v641_v8 }
  0x3c   :  { %580 = vmatmul.mubr.f32.gmra.mrb[12].mxu0 %v48_v33 }
  0x3d   :  { %582 = vmatprep.mubr.f32.mxu0 %v49_v35  ;;  %644 = vmatpush3.bf16.msra.mxu0 %v643_v17 }
  0x3e   :  { %646 = vmatprep.subr.bf16.mxu0 %v645_v20 }
  0x40   :  { %583 = vmatmul.mubr.f32.gmra.mrb[14].mxu0 %v50_v36 }
  0x41   :  { %648 = vmatpush3.bf16.msra.mxu0 %v647_v24  ;;  %315 = vmatprep.mubr.f32.mxu0 %v693_v0 }
  0xf7   :  { %v563_v37 = vpop.f32.mrb[0].mxu0 }
  0xf8   :  { %v133_v38 = vpop.f32.mrb[1].mxu0 }
  0xf9   :  { %316 = vmatmul.mubr.f32.vlgmr.msra.gmra.mrb[16].mxu0 %v133_v38 }
  0xfa   :  { %320 = vmatprep.mubr.f32.mxu0 %v698_v1 }
  0xfb   :  { %v566_v39 = vpop.f32.mrb[2].mxu0 }
  0xfc   :  { %v143_v40 = vpop.f32.mrb[3].mxu0 }
  0xfd   :  { %321 = vmatmul.mubr.f32.gmra.mrb[18].mxu0 %v563_v37 }
  0xfe   :  { %325 = vmatprep.mubr.f32.mxu0 %v703_v2 }
  0xff   :  { %v569_v42 = vpop.f32.mrb[4].mxu0 }
 0x100   :  { %v153_v44 = vpop.f32.mrb[5].mxu0 }
 0x101   :  { %326 = vmatmul.mubr.f32.gmra.mrb[20].mxu0 %v143_v40  ;;  %336 = vmatmul.mubr.f32.vlgmr.msra.gmra.mrb[0].mxu1 %v153_v44 }
 0x102   :  { %330 = vmatprep.mubr.f32.mxu0 %v710_v4  ;;  %340 = vmatprep.mubr.f32.mxu1 %v720_v7 }
 0x103   :  { %v572_v45 = vpop.f32.mrb[6].mxu0 }
 0x104   :  { %v163_v0 = vpop.f32.mrb[7].mxu0 }
 0x105   :  { %331 = vmatmul.mubr.f32.gmra.mrb[22].mxu0 %v566_v39  ;;  %341 = vmatmul.mubr.f32.gmra.mrb[2].mxu1 %v569_v42 }
 0x106   :  { %345 = vmatprep.mubr.f32.mxu1 %v729_v10 }
 0x107   :  { %v575_v1 = vpop.f32.mrb[8].mxu0 }
 0x108   :  { %v173_v46 = vpop.f32.mrb[9].mxu0 }
 0x109   :  { %346 = vmatmul.mubr.f32.gmra.mrb[4].mxu1 %v163_v0 }
 0x10a   :  { %350 = vmatprep.mubr.f32.mxu1 %v734_v11  ;;  %v973_v11 = vld [vmem:[%s1042_s3] ss:$0 sm:$0xff] }
 0x10b   :  { %v578_v2 = vpop.f32.mrb[10].mxu0 }
 0x10c   :  { %v183_v47 = vpop.f32.mrb[11].mxu0 }
 0x10d   :  { %351 = vmatmul.mubr.f32.gmra.mrb[6].mxu1 %v572_v45 }
 0x10e   :  { %355 = vmatprep.mubr.f32.mxu1 %v741_v13 }
 0x10f   :  { %v581_v48 = vpop.f32.mrb[12].mxu0 }
 0x110   :  { %v193_v4 = vpop.f32.mrb[13].mxu0 }
 0x111   :  { %356 = vmatmul.mubr.f32.gmra.mrb[8].mxu1 %v173_v46 }
 0x112   :  { %360 = vmatprep.mubr.f32.mxu1 %v746_v14 }
 0x113   :  { %v584_v7 = vpop.f32.mrb[14].mxu0 }
 0x114   :  { %v203_v49 = vpop.f32.mrb[15].mxu0 }
 0x115   :  { %361 = vmatmul.mubr.f32.gmra.mrb[10].mxu1 %v575_v1 }
 0x116   :  { %365 = vmatprep.mubr.f32.mxu1 %v773_v23 }
 0x119   :  { %366 = vmatmul.mubr.f32.gmra.mrb[12].mxu1 %v183_v47 }
 0x11a   :  { %370 = vmatprep.mubr.f32.mxu1 %v780_v25 }
 0x11d   :  { %371 = vmatmul.mubr.f32.gmra.mrb[14].mxu1 %v578_v2 }
 0x11e   :  { %375 = vmatprep.mubr.f32.mxu1 %v804_v32 }
 0x121   :  { %376 = vmatmul.mubr.f32.gmra.mrb[16].mxu1 %v193_v4 }
 0x122   :  { %380 = vmatprep.mubr.f32.mxu1 %v811_v34 }
 0x125   :  { %381 = vmatmul.mubr.f32.gmra.mrb[18].mxu1 %v581_v48 }
 0x126   :  { %385 = vmatprep.mubr.f32.mxu1 %v834_v41 }
 0x129   :  { %386 = vmatmul.mubr.f32.gmra.mrb[20].mxu1 %v203_v49 }
 0x12a   :  { %390 = vmatprep.mubr.f32.mxu1 %v841_v43 }
 0x12d   :  { %391 = vmatmul.mubr.f32.gmra.mrb[22].mxu1 %v584_v7 }
 0x1cc   :  { %v481_v10 = vpop.f32.mrb[16].mxu0 }
 0x1cd   :  { %v482_v13 = vpop.f32.mrb[17].mxu0 }
 0x1ce   :  { %v483_v14 = vadd.f32 %v482_v13, %v481_v10 }
 0x1d0   :  { %v318_v23 = vadd.f32 %v483_v14, %v973_v11  ;;  %v484_v25 = vpop.f32.mrb[18].mxu0 }
 0x1d1   :  { %v485_v32 = vpop.f32.mrb[19].mxu0 }
 0x1d2   :  { %396 = vst [vmem:[%s1043_s4] sm:$0xff] %v318_v23  ;;  %v486_v34 = vadd.f32 %v485_v32, %v484_v25 }
 0x1d4   :  { %v323_v41 = vadd.f32 %v486_v34, %v973_v11  ;;  %v487_v43 = vpop.f32.mrb[20].mxu0  ;;  %v493_v50 = vpop.f32.mrb[0].mxu1 }
 0x1d5   :  { %v488_v51 = vpop.f32.mrb[21].mxu0  ;;  %v494_v52 = vpop.f32.mrb[1].mxu1 }
 0x1d6   :  { %397 = vst [vmem:[%s1043_s4 + $0x8] sm:$0xff] %v323_v41  ;;  %v489_v53 = vadd.f32 %v488_v51, %v487_v43  ;;  %v495_v54 = vadd.f32 %v494_v52, %v493_v50 }
 0x1d8   :  { %v328_v55 = vadd.f32 %v489_v53, %v973_v11  ;;  %v338_v56 = vadd.f32 %v495_v54, %v973_v11  ;;  %v490_v57 = vpop.f32.mrb[22].mxu0  ;;  %v496_v58 = vpop.f32.mrb[2].mxu1 }
 0x1d9   :  { %v491_v59 = vpop.f32.mrb[23].mxu0  ;;  %v497_v60 = vpop.f32.mrb[3].mxu1 }
 0x1da   :  { %398 = vst [vmem:[%s1043_s4 + $0x10] sm:$0xff] %v328_v55  ;;  %400 = vst [vmem:[%s1043_s4 + $0x20] sm:$0xff] %v338_v56  ;;  %v492_v61 = vadd.f32 %v491_v59, %v490_v57  ;;  %v498_v62 = vadd.f32 %v497_v60, %v496_v58 }
 0x1dc   :  { %v333_v63 = vadd.f32 %v492_v61, %v973_v11  ;;  %v343_v3 = vadd.f32 %v498_v62, %v973_v11  ;;  %v499_v5 = vpop.f32.mrb[4].mxu1 }
 0x1dd   :  { %v500_v6 = vpop.f32.mrb[5].mxu1 }
 0x1de   :  { %399 = vst [vmem:[%s1043_s4 + $0x18] sm:$0xff] %v333_v63  ;;  %401 = vst [vmem:[%s1043_s4 + $0x28] sm:$0xff] %v343_v3  ;;  %v501_v8 = vadd.f32 %v500_v6, %v499_v5 }
 0x1e0   :  { %v348_v9 = vadd.f32 %v501_v8, %v973_v11  ;;  %v502_v12 = vpop.f32.mrb[6].mxu1 }
 0x1e1   :  { %v503_v15 = vpop.f32.mrb[7].mxu1 }
 0x1e2   :  { %402 = vst [vmem:[%s1043_s4 + $0x30] sm:$0xff] %v348_v9  ;;  %v504_v16 = vadd.f32 %v503_v15, %v502_v12 }
 0x1e4   :  { %v353_v17 = vadd.f32 %v504_v16, %v973_v11  ;;  %v505_v18 = vpop.f32.mrb[8].mxu1 }
 0x1e5   :  { %v506_v19 = vpop.f32.mrb[9].mxu1 }
 0x1e6   :  { %403 = vst [vmem:[%s1043_s4 + $0x38] sm:$0xff] %v353_v17  ;;  %v507_v20 = vadd.f32 %v506_v19, %v505_v18 }
 0x1e8   :  { %v358_v21 = vadd.f32 %v507_v20, %v973_v11  ;;  %v508_v22 = vpop.f32.mrb[10].mxu1 }
 0x1e9   :  { %v509_v24 = vpop.f32.mrb[11].mxu1 }
 0x1ea   :  { %404 = vst [vmem:[%s1043_s4 + $0x40] sm:$0xff] %v358_v21  ;;  %v510_v26 = vadd.f32 %v509_v24, %v508_v22 }
 0x1ec   :  { %v363_v27 = vadd.f32 %v510_v26, %v973_v11  ;;  %v511_v28 = vpop.f32.mrb[12].mxu1 }
 0x1ed   :  { %v512_v29 = vpop.f32.mrb[13].mxu1 }
 0x1ee   :  { %405 = vst [vmem:[%s1043_s4 + $0x48] sm:$0xff] %v363_v27  ;;  %v513_v30 = vadd.f32 %v512_v29, %v511_v28 }
 0x1f0   :  { %v368_v31 = vadd.f32 %v513_v30, %v973_v11  ;;  %v514_v33 = vpop.f32.mrb[14].mxu1 }
 0x1f1   :  { %v515_v35 = vpop.f32.mrb[15].mxu1 }
 0x1f2   :  { %406 = vst [vmem:[%s1043_s4 + $0x50] sm:$0xff] %v368_v31  ;;  %v516_v36 = vadd.f32 %v515_v35, %v514_v33 }
 0x1f4   :  { %v373_v37 = vadd.f32 %v516_v36, %v973_v11  ;;  %v517_v38 = vpop.f32.mrb[16].mxu1 }
 0x1f5   :  { %v518_v39 = vpop.f32.mrb[17].mxu1 }
 0x1f6   :  { %407 = vst [vmem:[%s1043_s4 + $0x58] sm:$0xff] %v373_v37  ;;  %v519_v40 = vadd.f32 %v518_v39, %v517_v38 }
 0x1f8   :  { %v378_v42 = vadd.f32 %v519_v40, %v973_v11  ;;  %v520_v44 = vpop.f32.mrb[18].mxu1 }
 0x1f9   :  { %v521_v45 = vpop.f32.mrb[19].mxu1 }
 0x1fa   :  { %408 = vst [vmem:[%s1043_s4 + $0x60] sm:$0xff] %v378_v42  ;;  %v522_v0 = vadd.f32 %v521_v45, %v520_v44 }
 0x1fc   :  { %v383_v1 = vadd.f32 %v522_v0, %v973_v11  ;;  %v523_v46 = vpop.f32.mrb[20].mxu1 }
 0x1fd   :  { %v524_v2 = vpop.f32.mrb[21].mxu1 }
 0x1fe   :  { %409 = vst [vmem:[%s1043_s4 + $0x68] sm:$0xff] %v383_v1  ;;  %v525_v47 = vadd.f32 %v524_v2, %v523_v46 }
 0x200   :  { %v388_v48 = vadd.f32 %v525_v47, %v973_v11  ;;  %v526_v4 = vpop.f32.mrb[22].mxu1 }
 0x201   :  { %v527_v7 = vpop.f32.mrb[23].mxu1 }
 0x202   :  { %410 = vst [vmem:[%s1043_s4 + $0x70] sm:$0xff] %v388_v48  ;;  %v528_v49 = vadd.f32 %v527_v7, %v526_v4 }
 0x204   :  { %v393_v10 = vadd.f32 %v528_v49, %v973_v11 }
 0x206   :  { %411 = vst [vmem:[%s1043_s4 + $0x78] sm:$0xff] %v393_v10 }

// kernel: model_forward.5
= control target key start
LH: loop header
LB: loop body
LE: loop exit
PB: predicated region body
PF: predicated region fallthrough
CT: control target
= control target key end

     0   :  { %s1055_s1 = inlined_call_operand.vmem [shape: f32[128,128], index: 1, kind: input, shape index: {}]   ;;  %s1056_s0 = inlined_call_operand.vmem [shape: f32[128,128], index: 0, kind: input, shape index: {}]   ;;  %s1057_s2 = inlined_call_operand.vmem [shape: f32[256,128], index: 2, kind: input, shape index: {}]   ;;  %s1058_s3 = inlined_call_operand.vmem [shape: f32[1,128], index: 3, kind: input, shape index: {}]   ;;  %s1059_s4 = inlined_call_operand.vmem [shape: f32[128,128], index: 4, kind: output, shape index: {}]  }
   0x1   :  { %v709_v0 = vld [vmem:[%s1055_s1] sm:$0xff]  ;;  %v714_v1 = vld [vmem:[%s1055_s1 + $0x8] sm:$0xff]  ;;  %v719_v2 = vld [vmem:[%s1055_s1 + $0x10] sm:$0xff] }
   0x2   :  { %v601_v3 = vpack.c.bf16 %v714_v1, %v709_v0  ;;  %v726_v4 = vld [vmem:[%s1055_s1 + $0x18] sm:$0xff]  ;;  %v55_v5 = vld [vmem:[%s1055_s1 + $0x20] sm:$0xff]  ;;  %v736_v7 = vld [vmem:[%s1055_s1 + $0x28] sm:$0xff] }
   0x3   :  { %v605_v6 = vpack.c.bf16 %v726_v4, %v719_v2  ;;  %335 = vmatprep.mubr.f32.mxu1 %v55_v5  ;;  %v609_v8 = vpack.c.bf16 %v736_v7, %v55_v5  ;;  %v35_v9 = vld [vmem:[%s1056_s0] sm:$0xff]  ;;  %v745_v10 = vld [vmem:[%s1055_s1 + $0x30] sm:$0xff]  ;;  %v750_v11 = vld [vmem:[%s1055_s1 + $0x38] sm:$0xff] }
   0x4   :  { %602 = vmatprep.subr.bf16.mxu0 %v601_v3  ;;  %577 = vmatprep.mubr.f32.mxu0 %v35_v9  ;;  %v613_v12 = vpack.c.bf16 %v750_v11, %v745_v10  ;;  %v757_v13 = vld [vmem:[%s1055_s1 + $0x40] sm:$0xff]  ;;  %v762_v14 = vld [vmem:[%s1055_s1 + $0x48] sm:$0xff]  ;;  %v230_v20 = vld [vmem:[%s1057_s2 + $0x90] sm:$0xff] }
   0x5   :  { %604 = vmatpush3.bf16.msra.mxu0 %v601_v3  ;;  %v228_v15 = vld [vmem:[%s1057_s2 + $0x80] sm:$0xff]  ;;  %v229_v16 = vld [vmem:[%s1057_s2 + $0x88] sm:$0xff]  ;;  %v231_v21 = vld [vmem:[%s1057_s2 + $0x98] sm:$0xff]  ;;  %v617_v22 = vpack.c.bf16 %v762_v14, %v757_v13 }
   0x6   :  { %606 = vmatprep.subr.bf16.mxu0 %v605_v6  ;;  %v212_v17 = vld [vmem:[%s1057_s2] sm:$0xff]  ;;  %v213_v18 = vld [vmem:[%s1057_s2 + $0x8] sm:$0xff]  ;;  %v776_v19 = vpack.c.bf16 %v229_v16, %v228_v15  ;;  %v789_v23 = vld [vmem:[%s1055_s1 + $0x50] sm:$0xff]  ;;  %v798_v26 = vpack.c.bf16 %v231_v21, %v230_v20 }
   0x7   :  { %v791_v24 = vpack.c.bf16 %v213_v18, %v212_v17  ;;  %v796_v25 = vld [vmem:[%s1055_s1 + $0x58] sm:$0xff]  ;;  %v214_v27 = vld [vmem:[%s1057_s2 + $0x10] sm:$0xff]  ;;  %v232_v29 = vld [vmem:[%s1057_s2 + $0xa0] sm:$0xff] }
   0x8   :  { %v215_v28 = vld [vmem:[%s1057_s2 + $0x18] sm:$0xff]  ;;  %665 = vmatprep.subr.bf16.mxu1 %v776_v19  ;;  %v233_v30 = vld [vmem:[%s1057_s2 + $0xa8] sm:$0xff]  ;;  %v621_v31 = vpack.c.bf16 %v796_v25, %v789_v23  ;;  %v820_v32 = vld [vmem:[%s1055_s1 + $0x60] sm:$0xff] }
   0x9   :  { %608 = vmatpush3.bf16.msra.mxu0 %v605_v6  ;;  %673 = vmatpush3.bf16.msra.mxu1 %v791_v24  ;;  %v822_v33 = vpack.c.bf16 %v215_v28, %v214_v27  ;;  %v827_v34 = vld [vmem:[%s1055_s1 + $0x68] sm:$0xff]  ;;  %v829_v35 = vpack.c.bf16 %v233_v30, %v232_v29  ;;  %v216_v36 = vld [vmem:[%s1057_s2 + $0x20] sm:$0xff]  ;;  %v234_v38 = vld [vmem:[%s1057_s2 + $0xb0] sm:$0xff] }
   0xa   :  { %610 = vmatprep.subr.bf16.mxu0 %v609_v8  ;;  %666 = vmatprep.subr.bf16.mxu1 %v798_v26  ;;  %v217_v37 = vld [vmem:[%s1057_s2 + $0x28] sm:$0xff]  ;;  %v235_v39 = vld [vmem:[%s1057_s2 + $0xb8] sm:$0xff]  ;;  %v625_v40 = vpack.c.bf16 %v827_v34, %v820_v32  ;;  %v850_v41 = vld [vmem:[%s1055_s1 + $0x70] sm:$0xff] }
   0xb   :  { %v852_v42 = vpack.c.bf16 %v217_v37, %v216_v36  ;;  %v857_v43 = vld [vmem:[%s1055_s1 + $0x78] sm:$0xff]  ;;  %v859_v44 = vpack.c.bf16 %v235_v39, %v234_v38  ;;  %v218_v45 = vld [vmem:[%s1057_s2 + $0x30] sm:$0xff]  ;;  %v236_v47 = vld [vmem:[%s1057_s2 + $0xc0] sm:$0xff] }
   0xc   :  { %v219_v46 = vld [vmem:[%s1057_s2 + $0x38] sm:$0xff]  ;;  %v237_v48 = vld [vmem:[%s1057_s2 + $0xc8] sm:$0xff]  ;;  %v629_v49 = vpack.c.bf16 %v857_v43, %v850_v41  ;;  %v220_v52 = vld [vmem:[%s1057_s2 + $0x40] sm:$0xff] }
   0xd   :  { %612 = vmatpush3.bf16.msra.mxu0 %v609_v8  ;;  %674 = vmatpush3.bf16.msra.mxu1 %v822_v33  ;;  %v647_v50 = vpack.c.bf16 %v219_v46, %v218_v45  ;;  %v649_v51 = vpack.c.bf16 %v237_v48, %v236_v47  ;;  %v221_v53 = vld [vmem:[%s1057_s2 + $0x48] sm:$0xff]  ;;  %v238_v54 = vld [vmem:[%s1057_s2 + $0xd0] sm:$0xff]  ;;  %v239_v55 = vld [vmem:[%s1057_s2 + $0xd8] sm:$0xff] }
   0xe   :  { %614 = vmatprep.subr.bf16.mxu0 %v613_v12  ;;  %667 = vmatprep.subr.bf16.mxu1 %v829_v35  ;;  %v651_v56 = vpack.c.bf16 %v221_v53, %v220_v52  ;;  %v653_v57 = vpack.c.bf16 %v239_v55, %v238_v54  ;;  %v222_v58 = vld [vmem:[%s1057_s2 + $0x50] sm:$0xff]  ;;  %v223_v59 = vld [vmem:[%s1057_s2 + $0x58] sm:$0xff]  ;;  %v36_v60 = vld [vmem:[%s1056_s0 + $0x8] sm:$0xff] }
   0xf   :  { %v240_v61 = vld [vmem:[%s1057_s2 + $0xe0] sm:$0xff]  ;;  %v241_v62 = vld [vmem:[%s1057_s2 + $0xe8] sm:$0xff]  ;;  %v37_v63 = vld [vmem:[%s1056_s0 + $0x10] sm:$0xff]  ;;  %v655_v3 = vpack.c.bf16 %v223_v59, %v222_v58 }
  0x10   :  { %v224_v5 = vld [vmem:[%s1057_s2 + $0x60] sm:$0xff]  ;;  %v225_v6 = vld [vmem:[%s1057_s2 + $0x68] sm:$0xff]  ;;  %v657_v8 = vpack.c.bf16 %v241_v62, %v240_v61  ;;  %v38_v9 = vld [vmem:[%s1056_s0 + $0x18] sm:$0xff] }
  0x11   :  { %616 = vmatpush3.bf16.msra.mxu0 %v613_v12  ;;  %675 = vmatpush3.bf16.msra.mxu1 %v852_v42  ;;  %v242_v12 = vld [vmem:[%s1057_s2 + $0xf0] sm:$0xff]  ;;  %v243_v15 = vld [vmem:[%s1057_s2 + $0xf8] sm:$0xff]  ;;  %v39_v16 = vld [vmem:[%s1056_s0 + $0x20] sm:$0xff]  ;;  %v659_v17 = vpack.c.bf16 %v225_v6, %v224_v5 }
  0x12   :  { %618 = vmatprep.subr.bf16.mxu0 %v617_v22  ;;  %668 = vmatprep.subr.bf16.mxu1 %v859_v44  ;;  %v226_v18 = vld [vmem:[%s1057_s2 + $0x70] sm:$0xff]  ;;  %v661_v20 = vpack.c.bf16 %v243_v15, %v242_v12  ;;  %v40_v21 = vld [vmem:[%s1056_s0 + $0x28] sm:$0xff]  ;;  %v43_v27 = vld [vmem:[%s1056_s0 + $0x40] sm:$0xff] }
  0x13   :  { %v44_v28 = vld [vmem:[%s1056_s0 + $0x48] sm:$0xff]  ;;  %v45_v29 = vld [vmem:[%s1056_s0 + $0x50] sm:$0xff]  ;;  %v46_v30 = vld [vmem:[%s1056_s0 + $0x58] sm:$0xff] }
  0x14   :  { %v50_v36 = vld [vmem:[%s1056_s0 + $0x78] sm:$0xff] }
  0x15   :  { %620 = vmatpush3.bf16.msra.mxu0 %v617_v22  ;;  %676 = vmatpush3.bf16.msra.mxu1 %v647_v50  ;;  %v41_v22 = vld [vmem:[%s1056_s0 + $0x30] sm:$0xff] }
  0x16   :  { %622 = vmatprep.subr.bf16.mxu0 %v621_v31  ;;  %669 = vmatprep.subr.bf16.mxu1 %v649_v51 }
  0x19   :  { %624 = vmatpush3.bf16.msra.mxu0 %v621_v31  ;;  %677 = vmatpush3.bf16.msra.mxu1 %v651_v56  ;;  %v47_v31 = vld [vmem:[%s1056_s0 + $0x60] sm:$0xff] }
  0x1a   :  { %626 = vmatprep.subr.bf16.mxu0 %v625_v40  ;;  %670 = vmatprep.subr.bf16.mxu1 %v653_v57 }
  0x1d   :  { %628 = vmatpush3.bf16.msra.mxu0 %v625_v40  ;;  %678 = vmatpush3.bf16.msra.mxu1 %v655_v3 }
  0x1e   :  { %630 = vmatprep.subr.bf16.mxu0 %v629_v49  ;;  %671 = vmatprep.subr.bf16.mxu1 %v657_v8 }
  0x21   :  { %632 = vmatpush3.bf16.msra.mxu0 %v629_v49  ;;  %679 = vmatpush3.bf16.msra.mxu1 %v659_v17 }
  0x22   :  { %634 = vmatprep.subr.bf16.mxu0 %v776_v19  ;;  %v227_v19 = vld [vmem:[%s1057_s2 + $0x78] sm:$0xff]  ;;  %672 = vmatprep.subr.bf16.mxu1 %v661_v20 }
  0x24   :  { %578 = vmatmul.mubr.f32.vlgmr.msra.gmra.mrb[0].mxu0 %v36_v60 }
  0x25   :  { %580 = vmatprep.mubr.f32.mxu0 %v37_v63  ;;  %636 = vmatpush3.bf16.msra.mxu0 %v791_v24  ;;  %v663_v24 = vpack.c.bf16 %v227_v19, %v226_v18 }
  0x26   :  { %638 = vmatprep.subr.bf16.mxu0 %v798_v26  ;;  %v42_v26 = vld [vmem:[%s1056_s0 + $0x38] sm:$0xff] }
  0x27   :  { %680 = vmatpush3.bf16.msra.mxu1 %v663_v24 }
  0x28   :  { %581 = vmatmul.mubr.f32.gmra.mrb[2].mxu0 %v38_v9 }
  0x29   :  { %583 = vmatprep.mubr.f32.mxu0 %v39_v16  ;;  %640 = vmatpush3.bf16.msra.mxu0 %v822_v33  ;;  %v48_v33 = vld [vmem:[%s1056_s0 + $0x68] sm:$0xff] }
  0x2a   :  { %642 = vmatprep.subr.bf16.mxu0 %v829_v35  ;;  %v49_v35 = vld [vmem:[%s1056_s0 + $0x70] sm:$0xff] }
  0x2c   :  { %584 = vmatmul.mubr.f32.gmra.mrb[4].mxu0 %v40_v21 }
  0x2d   :  { %586 = vmatprep.mubr.f32.mxu0 %v41_v22  ;;  %644 = vmatpush3.bf16.msra.mxu0 %v852_v42 }
  0x2e   :  { %646 = vmatprep.subr.bf16.mxu0 %v859_v44 }
  0x30   :  { %587 = vmatmul.mubr.f32.gmra.mrb[6].mxu0 %v42_v26 }
  0x31   :  { %589 = vmatprep.mubr.f32.mxu0 %v43_v27  ;;  %648 = vmatpush3.bf16.msra.mxu0 %v647_v50 }
  0x32   :  { %650 = vmatprep.subr.bf16.mxu0 %v649_v51 }
  0x34   :  { %590 = vmatmul.mubr.f32.gmra.mrb[8].mxu0 %v44_v28 }
  0x35   :  { %592 = vmatprep.mubr.f32.mxu0 %v45_v29  ;;  %652 = vmatpush3.bf16.msra.mxu0 %v651_v56 }
  0x36   :  { %654 = vmatprep.subr.bf16.mxu0 %v653_v57 }
  0x38   :  { %593 = vmatmul.mubr.f32.gmra.mrb[10].mxu0 %v46_v30 }
  0x39   :  { %595 = vmatprep.mubr.f32.mxu0 %v47_v31  ;;  %656 = vmatpush3.bf16.msra.mxu0 %v655_v3 }
  0x3a   :  { %658 = vmatprep.subr.bf16.mxu0 %v657_v8 }
  0x3c   :  { %596 = vmatmul.mubr.f32.gmra.mrb[12].mxu0 %v48_v33 }
  0x3d   :  { %598 = vmatprep.mubr.f32.mxu0 %v49_v35  ;;  %660 = vmatpush3.bf16.msra.mxu0 %v659_v17 }
  0x3e   :  { %662 = vmatprep.subr.bf16.mxu0 %v661_v20 }
  0x40   :  { %599 = vmatmul.mubr.f32.gmra.mrb[14].mxu0 %v50_v36 }
  0x41   :  { %664 = vmatpush3.bf16.msra.mxu0 %v663_v24  ;;  %315 = vmatprep.mubr.f32.mxu0 %v709_v0 }
  0xf7   :  { %v579_v37 = vpop.f32.mrb[0].mxu0 }
  0xf8   :  { %v133_v38 = vpop.f32.mrb[1].mxu0 }
  0xf9   :  { %316 = vmatmul.mubr.f32.vlgmr.msra.gmra.mrb[16].mxu0 %v133_v38 }
  0xfa   :  { %320 = vmatprep.mubr.f32.mxu0 %v714_v1 }
  0xfb   :  { %v582_v39 = vpop.f32.mrb[2].mxu0 }
  0xfc   :  { %v143_v40 = vpop.f32.mrb[3].mxu0 }
  0xfd   :  { %321 = vmatmul.mubr.f32.gmra.mrb[18].mxu0 %v579_v37 }
  0xfe   :  { %325 = vmatprep.mubr.f32.mxu0 %v719_v2 }
  0xff   :  { %v585_v42 = vpop.f32.mrb[4].mxu0 }
 0x100   :  { %v153_v44 = vpop.f32.mrb[5].mxu0 }
 0x101   :  { %326 = vmatmul.mubr.f32.gmra.mrb[20].mxu0 %v143_v40  ;;  %336 = vmatmul.mubr.f32.vlgmr.msra.gmra.mrb[0].mxu1 %v153_v44 }
 0x102   :  { %330 = vmatprep.mubr.f32.mxu0 %v726_v4  ;;  %340 = vmatprep.mubr.f32.mxu1 %v736_v7 }
 0x103   :  { %v588_v45 = vpop.f32.mrb[6].mxu0 }
 0x104   :  { %v163_v0 = vpop.f32.mrb[7].mxu0 }
 0x105   :  { %331 = vmatmul.mubr.f32.gmra.mrb[22].mxu0 %v582_v39  ;;  %341 = vmatmul.mubr.f32.gmra.mrb[2].mxu1 %v585_v42 }
 0x106   :  { %345 = vmatprep.mubr.f32.mxu1 %v745_v10 }
 0x107   :  { %v591_v1 = vpop.f32.mrb[8].mxu0 }
 0x108   :  { %v173_v46 = vpop.f32.mrb[9].mxu0 }
 0x109   :  { %346 = vmatmul.mubr.f32.gmra.mrb[4].mxu1 %v163_v0 }
 0x10a   :  { %350 = vmatprep.mubr.f32.mxu1 %v750_v11  ;;  %v989_v11 = vld [vmem:[%s1058_s3] ss:$0 sm:$0xff] }
 0x10b   :  { %v594_v2 = vpop.f32.mrb[10].mxu0 }
 0x10c   :  { %v183_v47 = vpop.f32.mrb[11].mxu0 }
 0x10d   :  { %351 = vmatmul.mubr.f32.gmra.mrb[6].mxu1 %v588_v45 }
 0x10e   :  { %355 = vmatprep.mubr.f32.mxu1 %v757_v13 }
 0x10f   :  { %v597_v48 = vpop.f32.mrb[12].mxu0 }
 0x110   :  { %v193_v4 = vpop.f32.mrb[13].mxu0 }
 0x111   :  { %356 = vmatmul.mubr.f32.gmra.mrb[8].mxu1 %v173_v46 }
 0x112   :  { %360 = vmatprep.mubr.f32.mxu1 %v762_v14 }
 0x113   :  { %v600_v7 = vpop.f32.mrb[14].mxu0 }
 0x114   :  { %v203_v49 = vpop.f32.mrb[15].mxu0 }
 0x115   :  { %361 = vmatmul.mubr.f32.gmra.mrb[10].mxu1 %v591_v1 }
 0x116   :  { %365 = vmatprep.mubr.f32.mxu1 %v789_v23 }
 0x119   :  { %366 = vmatmul.mubr.f32.gmra.mrb[12].mxu1 %v183_v47 }
 0x11a   :  { %370 = vmatprep.mubr.f32.mxu1 %v796_v25 }
 0x11d   :  { %371 = vmatmul.mubr.f32.gmra.mrb[14].mxu1 %v594_v2 }
 0x11e   :  { %375 = vmatprep.mubr.f32.mxu1 %v820_v32 }
 0x121   :  { %376 = vmatmul.mubr.f32.gmra.mrb[16].mxu1 %v193_v4 }
 0x122   :  { %380 = vmatprep.mubr.f32.mxu1 %v827_v34 }
 0x125   :  { %381 = vmatmul.mubr.f32.gmra.mrb[18].mxu1 %v597_v48 }
 0x126   :  { %385 = vmatprep.mubr.f32.mxu1 %v850_v41 }
 0x129   :  { %386 = vmatmul.mubr.f32.gmra.mrb[20].mxu1 %v203_v49 }
 0x12a   :  { %390 = vmatprep.mubr.f32.mxu1 %v857_v43 }
 0x12d   :  { %391 = vmatmul.mubr.f32.gmra.mrb[22].mxu1 %v600_v7 }
 0x1cc   :  { %v497_v10 = vpop.f32.mrb[16].mxu0 }
 0x1cd   :  { %v498_v13 = vpop.f32.mrb[17].mxu0 }
 0x1ce   :  { %v499_v14 = vadd.f32 %v498_v13, %v497_v10 }
 0x1d0   :  { %v318_v23 = vadd.f32 %v499_v14, %v989_v11  ;;  %v500_v25 = vpop.f32.mrb[18].mxu0 }
 0x1d1   :  { %v501_v32 = vpop.f32.mrb[19].mxu0 }
 0x1d2   :  { %v396_v34 = vmax.f32 %v318_v23, 0.0  ;;  %v502_v50 = vadd.f32 %v501_v32, %v500_v25 }
 0x1d4   :  { %412 = vst [vmem:[%s1059_s4] sm:$0xff] %v396_v34  ;;  %v323_v41 = vadd.f32 %v502_v50, %v989_v11  ;;  %v503_v43 = vpop.f32.mrb[20].mxu0  ;;  %v509_v51 = vpop.f32.mrb[0].mxu1 }
 0x1d5   :  { %v504_v52 = vpop.f32.mrb[21].mxu0  ;;  %v510_v53 = vpop.f32.mrb[1].mxu1 }
 0x1d6   :  { %v397_v54 = vmax.f32 %v323_v41, 0.0  ;;  %v505_v55 = vadd.f32 %v504_v52, %v503_v43  ;;  %v511_v56 = vadd.f32 %v510_v53, %v509_v51 }
 0x1d8   :  { %413 = vst [vmem:[%s1059_s4 + $0x8] sm:$0xff] %v397_v54  ;;  %v328_v57 = vadd.f32 %v505_v55, %v989_v11  ;;  %v338_v58 = vadd.f32 %v511_v56, %v989_v11  ;;  %v506_v59 = vpop.f32.mrb[22].mxu0  ;;  %v512_v60 = vpop.f32.mrb[2].mxu1 }
 0x1d9   :  { %v507_v61 = vpop.f32.mrb[23].mxu0  ;;  %v513_v62 = vpop.f32.mrb[3].mxu1 }
 0x1da   :  { %v398_v63 = vmax.f32 %v328_v57, 0.0  ;;  %v400_v3 = vmax.f32 %v338_v58, 0.0  ;;  %v508_v5 = vadd.f32 %v507_v61, %v506_v59  ;;  %v514_v6 = vadd.f32 %v513_v62, %v512_v60 }
 0x1dc   :  { %414 = vst [vmem:[%s1059_s4 + $0x10] sm:$0xff] %v398_v63  ;;  %416 = vst [vmem:[%s1059_s4 + $0x20] sm:$0xff] %v400_v3  ;;  %v333_v8 = vadd.f32 %v508_v5, %v989_v11  ;;  %v343_v9 = vadd.f32 %v514_v6, %v989_v11  ;;  %v515_v12 = vpop.f32.mrb[4].mxu1 }
 0x1dd   :  { %v516_v15 = vpop.f32.mrb[5].mxu1 }
 0x1de   :  { %v399_v16 = vmax.f32 %v333_v8, 0.0  ;;  %v401_v17 = vmax.f32 %v343_v9, 0.0  ;;  %v517_v18 = vadd.f32 %v516_v15, %v515_v12 }
 0x1e0   :  { %415 = vst [vmem:[%s1059_s4 + $0x18] sm:$0xff] %v399_v16  ;;  %417 = vst [vmem:[%s1059_s4 + $0x28] sm:$0xff] %v401_v17  ;;  %v348_v19 = vadd.f32 %v517_v18, %v989_v11  ;;  %v518_v20 = vpop.f32.mrb[6].mxu1 }
 0x1e1   :  { %v519_v21 = vpop.f32.mrb[7].mxu1 }
 0x1e2   :  { %v402_v22 = vmax.f32 %v348_v19, 0.0  ;;  %v520_v24 = vadd.f32 %v519_v21, %v518_v20 }
 0x1e4   :  { %418 = vst [vmem:[%s1059_s4 + $0x30] sm:$0xff] %v402_v22  ;;  %v353_v26 = vadd.f32 %v520_v24, %v989_v11  ;;  %v521_v27 = vpop.f32.mrb[8].mxu1 }
 0x1e5   :  { %v522_v28 = vpop.f32.mrb[9].mxu1 }
 0x1e6   :  { %v403_v29 = vmax.f32 %v353_v26, 0.0  ;;  %v523_v30 = vadd.f32 %v522_v28, %v521_v27 }
 0x1e8   :  { %419 = vst [vmem:[%s1059_s4 + $0x38] sm:$0xff] %v403_v29  ;;  %v358_v31 = vadd.f32 %v523_v30, %v989_v11  ;;  %v524_v33 = vpop.f32.mrb[10].mxu1 }
 0x1e9   :  { %v525_v35 = vpop.f32.mrb[11].mxu1 }
 0x1ea   :  { %v404_v36 = vmax.f32 %v358_v31, 0.0  ;;  %v526_v37 = vadd.f32 %v525_v35, %v524_v33 }
 0x1ec   :  { %420 = vst [vmem:[%s1059_s4 + $0x40] sm:$0xff] %v404_v36  ;;  %v363_v38 = vadd.f32 %v526_v37, %v989_v11  ;;  %v527_v39 = vpop.f32.mrb[12].mxu1 }
 0x1ed   :  { %v528_v40 = vpop.f32.mrb[13].mxu1 }
 0x1ee   :  { %v405_v42 = vmax.f32 %v363_v38, 0.0  ;;  %v529_v44 = vadd.f32 %v528_v40, %v527_v39 }
 0x1f0   :  { %421 = vst [vmem:[%s1059_s4 + $0x48] sm:$0xff] %v405_v42  ;;  %v368_v45 = vadd.f32 %v529_v44, %v989_v11  ;;  %v530_v0 = vpop.f32.mrb[14].mxu1 }
 0x1f1   :  { %v531_v1 = vpop.f32.mrb[15].mxu1 }
 0x1f2   :  { %v406_v46 = vmax.f32 %v368_v45, 0.0  ;;  %v532_v2 = vadd.f32 %v531_v1, %v530_v0 }
 0x1f4   :  { %422 = vst [vmem:[%s1059_s4 + $0x50] sm:$0xff] %v406_v46  ;;  %v373_v47 = vadd.f32 %v532_v2, %v989_v11  ;;  %v533_v48 = vpop.f32.mrb[16].mxu1 }
 0x1f5   :  { %v534_v4 = vpop.f32.mrb[17].mxu1 }
 0x1f6   :  { %v407_v7 = vmax.f32 %v373_v47, 0.0  ;;  %v535_v49 = vadd.f32 %v534_v4, %v533_v48 }
 0x1f8   :  { %423 = vst [vmem:[%s1059_s4 + $0x58] sm:$0xff] %v407_v7  ;;  %v378_v10 = vadd.f32 %v535_v49, %v989_v11  ;;  %v536_v13 = vpop.f32.mrb[18].mxu1 }
 0x1f9   :  { %v537_v14 = vpop.f32.mrb[19].mxu1 }
 0x1fa   :  { %v408_v23 = vmax.f32 %v378_v10, 0.0  ;;  %v538_v25 = vadd.f32 %v537_v14, %v536_v13 }
 0x1fc   :  { %424 = vst [vmem:[%s1059_s4 + $0x60] sm:$0xff] %v408_v23  ;;  %v383_v32 = vadd.f32 %v538_v25, %v989_v11  ;;  %v539_v34 = vpop.f32.mrb[20].mxu1 }
 0x1fd   :  { %v540_v50 = vpop.f32.mrb[21].mxu1 }
 0x1fe   :  { %v409_v41 = vmax.f32 %v383_v32, 0.0  ;;  %v541_v43 = vadd.f32 %v540_v50, %v539_v34 }
 0x200   :  { %425 = vst [vmem:[%s1059_s4 + $0x68] sm:$0xff] %v409_v41  ;;  %v388_v51 = vadd.f32 %v541_v43, %v989_v11  ;;  %v542_v52 = vpop.f32.mrb[22].mxu1 }
 0x201   :  { %v543_v53 = vpop.f32.mrb[23].mxu1 }
 0x202   :  { %v410_v54 = vmax.f32 %v388_v51, 0.0  ;;  %v544_v55 = vadd.f32 %v543_v53, %v542_v52 }
 0x204   :  { %426 = vst [vmem:[%s1059_s4 + $0x70] sm:$0xff] %v410_v54  ;;  %v393_v56 = vadd.f32 %v544_v55, %v989_v11 }
 0x206   :  { %v411_v57 = vmax.f32 %v393_v56, 0.0 }
 0x208   :  { %427 = vst [vmem:[%s1059_s4 + $0x78] sm:$0xff] %v411_v57 }

// kernel: model_forward.7
= control target key start
LH: loop header
LB: loop body
LE: loop exit
PB: predicated region body
PF: predicated region fallthrough
CT: control target
= control target key end

     0   :  { %s284_s0 = inlined_call_operand.vmem [shape: s32[2,128], index: 0, kind: input, shape index: {}]   ;;  %s285_s1 = inlined_call_operand.vmem [shape: f32[128,128], index: 1, kind: input, shape index: {}]   ;;  %s286_s2 = inlined_call_operand.vmem [shape: f32[1,128], index: 2, kind: output, shape index: {}]  }
   0x1   :  { %s7_s11 = sshll.u32 %s284_s0, 4  ;;  %s8_s11 = int_to_ptr.vmem [resolvable:$true] %s7_s11 }
   0x2   :  { %s230_s12 = scalar_lea.vmem %s8_s11, 32  ;;  %p235_p1 = scmp.lt.s32.totalorder %s8_s11, %s8_s11 }
   0x3   :  { %p231_p0 = scmp.ne.s32.totalorder %s8_s11, %s230_s12  ;;  %p236_p2 = scmp.lt.s32.totalorder %s230_s12, %s230_s12 }
   0x5   :  { %p237_p3 = por %p236_p2, %p235_p1 }
   0x7   :  { %p238_p4 = pnand %p237_p3, %p231_p0 }
   0x9   :  { %241 = shalt.err (!%p238_p4)  }
   0xa   :  { %s252_s13 = smov [#allocation4]  }
   0xb   :  { %10 = dma.vmem_to_smem %s8_s11, 32, %s252_s13, [#allocation3] }
   0xc   :  { %246 = dma.done.wait [#allocation3], 32 }
   0xd   :  { %247 = vsyncadd [#allocation3], 4294967264 }
   0xe   :  { %12 = sfence }
   0xf   :  { %s248_s14 = smov 0  }
  0x10 LB: > { %s23_s15 = sld [smem:[#allocation4 + %s250_s14]]  ;;  %s24_s16 = sshra.s32 %s250_s14, 7  ;;  %s250_s14 = sphi %s248_s14, %s20_s14  }
  0x11   : > { %s139_s0 = sshll.u32 %s24_s16, 7  ;;  %s29_s17 = sand.u32 127, %s250_s14 }
  0x12   : > { %s140_s18 = sadd.s32 128, %s139_s0  ;;  %s37_s27 = scalar_lea.vmem [#allocation2], %s250_s14 }
  0x13   : > { %s30_s19 = sadd.s32 %s140_s18, %s29_s17  ;;  %s20_s14 = sadd.s32 1, %s250_s14  }
  0x14   : > { %s31_s20 = sld [smem:[#allocation4 + %s30_s19]]  ;;  %p17_p5 = scmp.ge.s32.totalorder %s20_s14, 128  }
  0x15   :  { %v253_v5 = vmov (%p17_p5), 0.0|0.0   ;;  %vm254_vm0 = vmmov (%p17_p5), 0   ;;  %v255_v7 = vmov (%p17_p5), 0.0   ;;  %v256_v29 = vmov (%p17_p5), 1.0  }
  0x16   : > { %s32_s23 = scalar_lea.vmem %s285_s1, %s23_s15  ;;  %193 = vmatprep.subr.bf16.mxu0 (%p17_p5), %v253_v5  ;;  %190 = vmatprep.mubr.msk.f32.mxu0 (%p17_p5), %vm254_vm0, %v255_v7 }
  0x17   : > { %v33_v0 = vld [vmem:[%s32_s23] sm:$0x1] }
  0x18   :  { %19 = sbr.rel (!%p17_p5) target bundleno = 16 (0x10), region = 34 }
  0x1a   : > { %s34_s26 = scalar_lea.vmem %s285_s1, %s31_s20 }
  0x1b   : > { %v35_v1 = vld [vmem:[%s34_s26] sm:$0x1] }
  0x1c   : > { %v36_v2 = vmul.f32 %v35_v1, %v33_v0 }
  0x1e   : > { %38 = vst [vmem:[%s37_s27] sm:$0x1] %v36_v2 }
  0x25   :  { %v39_v3 = vld [vmem:[#allocation2] sm:$0xff]  ;;  %v40_v4 = vld [vmem:[#allocation2 + $0x8] sm:$0xff]  ;;  %v41_v8 = vld [vmem:[#allocation2 + $0x10] sm:$0xff] }
  0x26   :  { %v194_v6 = vpack.c.bf16 %v40_v4, %v39_v3  ;;  %v42_v9 = vld [vmem:[#allocation2 + $0x18] sm:$0xff]  ;;  %v43_v11 = vld [vmem:[#allocation2 + $0x20] sm:$0xff]  ;;  %v44_v12 = vld [vmem:[#allocation2 + $0x28] sm:$0xff] }
  0x27   :  { %v197_v10 = vpack.c.bf16 %v42_v9, %v41_v8  ;;  %v200_v13 = vpack.c.bf16 %v44_v12, %v43_v11  ;;  %v45_v14 = vld [vmem:[#allocation2 + $0x30] sm:$0xff]  ;;  %v46_v15 = vld [vmem:[#allocation2 + $0x38] sm:$0xff]  ;;  %v47_v17 = vld [vmem:[#allocation2 + $0x40] sm:$0xff] }
  0x28   :  { %195 = vmatpush3.bf16.xpose.msra.mxu0 %v194_v6  ;;  %v203_v16 = vpack.c.bf16 %v46_v15, %v45_v14  ;;  %v48_v18 = vld [vmem:[#allocation2 + $0x48] sm:$0xff]  ;;  %v49_v20 = vld [vmem:[#allocation2 + $0x50] sm:$0xff]  ;;  %v50_v21 = vld [vmem:[#allocation2 + $0x58] sm:$0xff] }
  0x29   :  { %196 = vmatprep.subr.bf16.mxu0 %v253_v5  ;;  %v206_v19 = vpack.c.bf16 %v48_v18, %v47_v17  ;;  %v209_v22 = vpack.c.bf16 %v50_v21, %v49_v20  ;;  %v51_v23 = vld [vmem:[#allocation2 + $0x60] sm:$0xff]  ;;  %v52_v24 = vld [vmem:[#allocation2 + $0x68] sm:$0xff]  ;;  %v53_v26 = vld [vmem:[#allocation2 + $0x70] sm:$0xff] }
  0x2a   :  { %v212_v25 = vpack.c.bf16 %v52_v24, %v51_v23  ;;  %v54_v27 = vld [vmem:[#allocation2 + $0x78] sm:$0xff] }
  0x2b   :  { %v215_v28 = vpack.c.bf16 %v54_v27, %v53_v26 }
  0x30   :  { %198 = vmatpush3.bf16.xpose.msra.mxu0 %v197_v10 }
  0x31   :  { %199 = vmatprep.subr.bf16.mxu0 %v253_v5 }
  0x38   :  { %201 = vmatpush3.bf16.xpose.msra.mxu0 %v200_v13 }
  0x39   :  { %202 = vmatprep.subr.bf16.mxu0 %v253_v5 }
  0x40   :  { %204 = vmatpush3.bf16.xpose.msra.mxu0 %v203_v16 }
  0x41   :  { %205 = vmatprep.subr.bf16.mxu0 %v253_v5 }
  0x48   :  { %207 = vmatpush3.bf16.xpose.msra.mxu0 %v206_v19 }
  0x49   :  { %208 = vmatprep.subr.bf16.mxu0 %v253_v5 }
  0x50   :  { %210 = vmatpush3.bf16.xpose.msra.mxu0 %v209_v22 }
  0x51   :  { %211 = vmatprep.subr.bf16.mxu0 %v253_v5 }
  0x58   :  { %213 = vmatpush3.bf16.xpose.msra.mxu0 %v212_v25 }
  0x59   :  { %214 = vmatprep.subr.bf16.mxu0 %v253_v5 }
  0x60   :  { %216 = vmatpush3.bf16.xpose.msra.mxu0 %v215_v28 }
  0x67   :  { %191 = vmatmul.mubr.f32.vlgmr.msra.gmra.mrb[0].mxu0 %v256_v29 }
 0x13a   :  { %v121_v30 = vpop.f32.mrb[0].mxu0 }
 0x13b   :  { %125 = vst [vmem:[%s286_s2] sm:$0x1] %v121_v30  ;;  %v192_v31 = vpop.f32.mrb[1].mxu0 }

</bundles_post_ra>
